<compile_context>
chip_gen: v7x
topology: tpu7x:2x2x1
jax: 0.10.0
libtpu: 0.0.40
codegen_flags: <defaults>
</compile_context>

<pallas_src>
import functools

import jax
import jax.numpy as jnp
from jax.experimental import pallas as pl
from jax.experimental.pallas import tpu as pltpu

RANK = 128  # LoRA rank fixed by the module


def _round_up(v, m):
    return (v + m - 1) // m * m


def lora_kernel(x_ref, wt_ref, bias_ref, xa_ref, bsc_ref, o_ref, acc_ref, *, tk):
    """One (m, n, k) grid step of y = x @ W^T + bias + xa @ (B/128)."""
    k_idx = pl.program_id(2)
    num_k = pl.num_programs(2)

    # Initialize the accumulator with the LoRA up-projection: xa and B/128
    # are resident for the whole (m, n) tile.  This doubles as the k==0
    # zero-init and keeps the epilogue to a single add + store.
    @pl.when(k_idx == 0)
    def _():
        acc_ref[...] = jnp.dot(xa_ref[...], bsc_ref[...],
                               preferred_element_type=jnp.float32)

    # Frozen linear path: slice this step's K chunk out of the resident
    # x M-panel (start is a multiple of tk, tk is a multiple of 128) and
    # accumulate x @ W^T in f32.
    k0 = pl.multiple_of(k_idx * tk, tk)
    x = x_ref[:, pl.ds(k0, tk)]
    acc_ref[...] += jnp.dot(x, wt_ref[...], preferred_element_type=jnp.float32)

    # Epilogue at the last K tile: add bias, write the lane-dense output tile.
    @pl.when(k_idx == num_k - 1)
    def _():
        o_ref[...] = (acc_ref[...] + bias_ref[...]).astype(o_ref.dtype)


def prepare_lora_params(w, bias, lora_a, lora_b, *,
                        compute_dtype=jnp.bfloat16, tn=256, tk=512):
    """Host-side, once per parameter set (NOT per forward call):
    transpose the frozen weight, fold 1/RANK into Lora_B, pad everything to
    tile multiples and cast to the compute dtype (bias stays f32)."""
    w = jnp.asarray(w)
    bias = jnp.asarray(bias)
    lora_a = jnp.asarray(lora_a)
    lora_b = jnp.asarray(lora_b)

    N, K = w.shape
    tn = min(tn, _round_up(N, 128))
    tk = min(tk, _round_up(K, 128))
    Kp, Np = _round_up(K, tk), _round_up(N, tn)

    wt = jnp.pad(w.T, ((0, Kp - K), (0, Np - N))).astype(compute_dtype)       # (Kp, Np)
    bias2d = jnp.pad(bias.reshape(1, -1),
                     ((0, 0), (0, Np - N))).astype(jnp.float32)               # (1, Np)
    a_p = jnp.pad(lora_a, ((0, Kp - K), (0, 0))).astype(compute_dtype)        # (Kp, RANK)
    b_p = (jnp.pad(lora_b, ((0, 0), (0, Np - N)))
           * (1.0 / RANK)).astype(compute_dtype)                              # (RANK, Np)
    return wt, bias2d, a_p, b_p


@functools.partial(jax.jit, static_argnames=("out_features", "tm", "tn", "tk"))
def lora_forward(x, wt, bias2d, lora_a, lora_b_scaled, *,
                 out_features=None, tm=512, tn=256, tk=512):
    """x: (M, K).  Other args come from prepare_lora_params (pre-transposed,
    pre-scaled, pre-padded, pre-cast).  Returns (M, out_features) in x.dtype."""
    out_dtype = x.dtype
    compute_dtype = wt.dtype

    M, K = x.shape
    Kw, Nw = wt.shape
    if out_features is None:
        out_features = Nw

    # Clamp tiles to (aligned) problem sizes.
    tm = min(tm, _round_up(M, 8))
    tn = min(tn, _round_up(Nw, 128))
    tk = min(tk, _round_up(Kw, 128))
    Kp = _round_up(Kw, tk)
    Np = _round_up(Nw, tn)

    # Keep the resident x M-panel bounded (~8 MiB per buffer) so large-K
    # problems stay well inside the 32 MiB scoped-VMEM budget on every
    # generation (v7x has only 64 MiB physical VMEM).
    itemsize = jnp.dtype(compute_dtype).itemsize
    panel_cap = max(8, (8 * 1024 * 1024 // (Kp * itemsize)) // 8 * 8)
    tm = min(tm, panel_cap)
    Mp = _round_up(M, tm)

    # Per-call padding.  With prepare_lora_params the parameter branches are
    # Python no-ops (shapes already padded); only x is ever padded per call.
    x_p = x if (Mp, Kp) == (M, K) else jnp.pad(x, ((0, Mp - M), (0, Kp - K)))
    wt_p = wt if (Kp, Np) == (Kw, Nw) else jnp.pad(
        wt, ((0, Kp - Kw), (0, Np - Nw)))
    bias_p = bias2d if bias2d.shape[1] == Np else jnp.pad(
        bias2d, ((0, 0), (0, Np - bias2d.shape[1])))
    a_p = lora_a if lora_a.shape[0] == Kp else jnp.pad(
        lora_a, ((0, Kp - lora_a.shape[0]), (0, 0)))
    b_p = lora_b_scaled if lora_b_scaled.shape[1] == Np else jnp.pad(
        lora_b_scaled, ((0, 0), (0, Np - lora_b_scaled.shape[1])))

    x_c = x_p if x_p.dtype == compute_dtype else x_p.astype(compute_dtype)
    bias_p = bias_p if bias_p.dtype == jnp.float32 else bias_p.astype(jnp.float32)

    # Hoisted LoRA down-projection (tiny: M x 128).  Cast back to the compute
    # dtype so the in-kernel up-projection runs the MXU's native-width path
    # (documented precision concession for the bf16 configuration).
    xa = jnp.dot(x_c, a_p, preferred_element_type=jnp.float32).astype(compute_dtype)

    grid = (Mp // tm, Np // tn, Kp // tk)

    out_p = pl.pallas_call(
        functools.partial(lora_kernel, tk=tk),
        out_shape=jax.ShapeDtypeStruct((Mp, Np), out_dtype),
        grid_spec=pltpu.PrefetchScalarGridSpec(
            num_scalar_prefetch=0,
            grid=grid,
            in_specs=[
                # Resident x M-panel: DMA'd once per M tile, reused over n, k.
                pl.BlockSpec((tm, Kp), lambda m, n, k: (m, 0)),
                # Frozen-weight stream (the dominant HBM traffic).
                # TODO(synk): add pipeline_mode=pl.Buffered(3) here only if
                # profiling shows the W^T copy exposed.
                pl.BlockSpec((tk, tn), lambda m, n, k: (k, n)),
                pl.BlockSpec((1, tn), lambda m, n, k: (0, n)),       # bias (f32)
                pl.BlockSpec((tm, RANK), lambda m, n, k: (m, 0)),    # xa = x @ A
                pl.BlockSpec((RANK, tn), lambda m, n, k: (0, n)),    # B / 128
            ],
            out_specs=pl.BlockSpec((tm, tn), lambda m, n, k: (m, n)),
            scratch_shapes=[pltpu.VMEM((tm, tn), jnp.float32)],      # accumulator
        ),
        compiler_params=pltpu.CompilerParams(
            # xa is precomputed, so N has no cross-tile dependency: both M and
            # N are megacore-parallel (v7x); K carries the accumulator.
            dimension_semantics=("parallel", "parallel", "arbitrary"),
            # Footprint at the defaults is ~10-20 MiB; 32 MiB is safe on
            # v5e/v6e (128 MiB physical VMEM) and v7x (64 MiB physical).
            vmem_limit_bytes=32 * 1024 * 1024,
        ),
    )(x_c, wt_p, bias_p, xa, b_p)

    return out_p[:M, :out_features]


if __name__ == "__main__":
    key = jax.random.PRNGKey(0)
    k_x, k_w, k_b, k_a, k_bb = jax.random.split(key, 5)

    # Small but TPU-representative shapes; deliberately non-multiples of the
    # tiles to exercise the padding paths.
    M, IN_FEATURES, OUT_FEATURES = 512, 384, 640

    x = jax.random.normal(k_x, (M, IN_FEATURES), dtype=jnp.float32)

    # Parameters mirroring the module (nn.Linear weight/bias + LoRA factors).
    w = jax.random.normal(k_w, (OUT_FEATURES, IN_FEATURES), jnp.float32) * 0.05
    bias = jax.random.normal(k_b, (OUT_FEATURES,), jnp.float32) * 0.05
    lora_a = jax.random.normal(k_a, (IN_FEATURES, RANK), jnp.float32) * 0.1
    # The module initializes Lora_B to zeros; use a nonzero B here so the
    # LoRA path is actually exercised by the correctness checks.
    lora_b = jax.random.normal(k_bb, (RANK, OUT_FEATURES), jnp.float32) * 0.02

    # Pure-JAX reference for the module semantics.
    ref = (x @ w.T + bias) + (x @ lora_a @ lora_b) / RANK

    # 1) f32 path, tight check of the kernel math.  Small tiles so the grid
    #    is (2, 3, 2): exercises accumulator init / epilogue and padding.
    params32 = prepare_lora_params(w, bias, lora_a, lora_b,
                                   compute_dtype=jnp.float32, tn=256, tk=256)
    out32 = lora_forward(x, *params32, out_features=OUT_FEATURES,
                         tm=256, tn=256, tk=256)
    out32 = jax.block_until_ready(out32)
    assert out32.shape == ref.shape and out32.dtype == ref.dtype
    assert jnp.allclose(out32, ref, atol=1e-4, rtol=1e-4), "f32 mismatch vs reference"

    # 2) bf16 frozen-path (the production configuration): params and the x
    #    stream in bf16, f32 accumulation.  Loose tolerance vs f32 reference.
    params16 = prepare_lora_params(w, bias, lora_a, lora_b,
                                   compute_dtype=jnp.bfloat16)
    out16 = lora_forward(x, *params16, out_features=OUT_FEATURES)
    out16 = jax.block_until_ready(out16)
    assert out16.shape == ref.shape and out16.dtype == ref.dtype
    assert jnp.allclose(out16, ref, atol=5e-2, rtol=5e-2), "bf16 mismatch vs reference"

    print("KERNEL_OK")
</pallas_src>

<mosaic_0001>
module attributes {stable_mosaic.version = 11 : i64} {
  func.func @lora_kernel(%arg0: i32, %arg1: i32, %arg2: i32, %arg3: memref<256x512xf32, #tpu.memory_space<vmem>>, %arg4: memref<256x256xf32, #tpu.memory_space<vmem>>, %arg5: memref<1x256xf32, #tpu.memory_space<vmem>>, %arg6: memref<256x128xf32, #tpu.memory_space<vmem>>, %arg7: memref<128x256xf32, #tpu.memory_space<vmem>>, %arg8: memref<256x256xf32, #tpu.memory_space<vmem>>, %arg9: memref<256x256xf32, #tpu.memory_space<vmem>>) attributes {dimension_semantics = [#tpu.dimension_semantics<parallel>, #tpu.dimension_semantics<parallel>, #tpu.dimension_semantics<arbitrary>], iteration_bounds = array<i64: 2, 3, 2>, scalar_prefetch = 0 : i64, scratch_operands = 1 : i64, tpu.core_type = #tpu.core_type<tc>, window_params = [{transform_indices = @transform_0, window_bounds = array<i64: 256, 512>}, {transform_indices = @transform_1, window_bounds = array<i64: 256, 256>}, {transform_indices = @transform_2, window_bounds = array<i64: 1, 256>}, {transform_indices = @transform_3, window_bounds = array<i64: 256, 128>}, {transform_indices = @transform_4, window_bounds = array<i64: 128, 256>}, {transform_indices = @transform_5, window_bounds = array<i64: 256, 256>}]} {
    %c0_i32 = arith.constant 0 : i32
    %0 = arith.cmpi eq, %arg2, %c0_i32 : i32
    %1 = arith.extui %0 : i1 to i32
    %c0_i32_0 = arith.constant 0 : i32
    %2 = arith.cmpi ne, %1, %c0_i32_0 : i32
    scf.if %2 {
      %c0_8 = arith.constant 0 : index
      %c0_9 = arith.constant 0 : index
      %15 = vector.load %arg6[%c0_8, %c0_9] : memref<256x128xf32, #tpu.memory_space<vmem>>, vector<256x128xf32>
      %c0_10 = arith.constant 0 : index
      %c0_11 = arith.constant 0 : index
      %16 = vector.load %arg7[%c0_10, %c0_11] : memref<128x256xf32, #tpu.memory_space<vmem>>, vector<128x256xf32>
      %cst_12 = arith.constant dense<0.000000e+00> : vector<256x256xf32>
      %17 = tpu.matmul %15, %16, %cst_12 {dimension_numbers = #tpu.dot_dimension_numbers<[1], [0], [0], [1], [0, 0, 1, 1], [], []>} : vector<256x128xf32>, vector<128x256xf32>, vector<256x256xf32> -> vector<256x256xf32>
      %c0_13 = arith.constant 0 : index
      %c0_14 = arith.constant 0 : index
      %18 = vector.load %arg9[%c0_13, %c0_14] : memref<256x256xf32, #tpu.memory_space<vmem>>, vector<256x256xf32>
      tpu.vector_store %arg9[%c0_13, %c0_14], %17 {strides = array<i32>} : memref<256x256xf32, #tpu.memory_space<vmem>>, vector<256x256xf32>,
    } else {
    }
    %c256_i32 = arith.constant 256 : i32
    %3 = arith.muli %arg2, %c256_i32 : i32
    %4 = tpu.assume_multiple %3, 256 : i32
    %c0 = arith.constant 0 : index
    %5 = arith.index_cast %4 : i32 to index
    %6 = vector.load %arg3[%c0, %5] : memref<256x512xf32, #tpu.memory_space<vmem>>, vector<256x256xf32>
    %c0_1 = arith.constant 0 : index
    %c0_2 = arith.constant 0 : index
    %7 = vector.load %arg9[%c0_1, %c0_2] : memref<256x256xf32, #tpu.memory_space<vmem>>, vector<256x256xf32>
    %c0_3 = arith.constant 0 : index
    %c0_4 = arith.constant 0 : index
    %8 = vector.load %arg4[%c0_3, %c0_4] : memref<256x256xf32, #tpu.memory_space<vmem>>, vector<256x256xf32>
    %cst = arith.constant dense<0.000000e+00> : vector<256x256xf32>
    %9 = tpu.matmul %6, %8, %cst {dimension_numbers = #tpu.dot_dimension_numbers<[1], [0], [0], [1], [0, 0, 1, 1], [], []>} : vector<256x256xf32>, vector<256x256xf32>, vector<256x256xf32> -> vector<256x256xf32>
    %10 = arith.addf %7, %9 : vector<256x256xf32>
    %c0_5 = arith.constant 0 : index
    %c0_6 = arith.constant 0 : index
    %11 = vector.load %arg9[%c0_5, %c0_6] : memref<256x256xf32, #tpu.memory_space<vmem>>, vector<256x256xf32>
    tpu.vector_store %arg9[%c0_5, %c0_6], %10 {strides = array<i32>} : memref<256x256xf32, #tpu.memory_space<vmem>>, vector<256x256xf32>,
    %c1_i32 = arith.constant 1 : i32
    %12 = arith.cmpi eq, %arg2, %c1_i32 : i32
    %13 = arith.extui %12 : i1 to i32
    %c0_i32_7 = arith.constant 0 : i32
    %14 = arith.cmpi ne, %13, %c0_i32_7 : i32
    scf.if %14 {
      %c0_8 = arith.constant 0 : index
      %c0_9 = arith.constant 0 : index
      %15 = vector.load %arg9[%c0_8, %c0_9] : memref<256x256xf32, #tpu.memory_space<vmem>>, vector<256x256xf32>
      %c0_10 = arith.constant 0 : index
      %c0_11 = arith.constant 0 : index
      %16 = vector.load %arg5[%c0_10, %c0_11] : memref<1x256xf32, #tpu.memory_space<vmem>>, vector<1x256xf32>
      %17 = vector.broadcast %16 : vector<1x256xf32> to vector<256x256xf32>
      %18 = arith.addf %15, %17 : vector<256x256xf32>
      %c0_12 = arith.constant 0 : index
      %c0_13 = arith.constant 0 : index
      %19 = vector.load %arg8[%c0_12, %c0_13] : memref<256x256xf32, #tpu.memory_space<vmem>>, vector<256x256xf32>
      tpu.vector_store %arg8[%c0_12, %c0_13], %18 {strides = array<i32>} : memref<256x256xf32, #tpu.memory_space<vmem>>, vector<256x256xf32>,
    } else {
    }
    return
  }
  func.func @transform_0(%arg0: i32, %arg1: i32, %arg2: i32) -> (i32, i32) {
    %c0_i32 = arith.constant 0 : i32
    %c0_i32_0 = arith.constant 0 : i32
    return %arg0, %c0_i32 : i32, i32
  }
  func.func @transform_1(%arg0: i32, %arg1: i32, %arg2: i32) -> (i32, i32) {
    %c0_i32 = arith.constant 0 : i32
    return %arg2, %arg1 : i32, i32
  }
  func.func @transform_2(%arg0: i32, %arg1: i32, %arg2: i32) -> (i32, i32) {
    %c0_i32 = arith.constant 0 : i32
    %c0_i32_0 = arith.constant 0 : i32
    return %c0_i32, %arg1 : i32, i32
  }
  func.func @transform_3(%arg0: i32, %arg1: i32, %arg2: i32) -> (i32, i32) {
    %c0_i32 = arith.constant 0 : i32
    %c0_i32_0 = arith.constant 0 : i32
    return %arg0, %c0_i32 : i32, i32
  }
  func.func @transform_4(%arg0: i32, %arg1: i32, %arg2: i32) -> (i32, i32) {
    %c0_i32 = arith.constant 0 : i32
    %c0_i32_0 = arith.constant 0 : i32
    return %c0_i32, %arg1 : i32, i32
  }
  func.func @transform_5(%arg0: i32, %arg1: i32, %arg2: i32) -> (i32, i32) {
    %c0_i32 = arith.constant 0 : i32
    return %arg0, %arg1 : i32, i32
  }
}

</mosaic_0001>

<bundles_post_ra>
// kernel: lora_forward.1
= control target key start
LH: loop header
LB: loop body
LE: loop exit
PB: predicated region body
PF: predicated region fallthrough
CT: control target
= control target key end

     0   :  { %s3371_s0 = inlined_call_operand.vmem [shape: f32[512,512], index: 0, kind: input, shape index: {}]   ;;  %s3372_s1 = inlined_call_operand.vmem [shape: f32[512,768], index: 1, kind: input, shape index: {}]   ;;  %s3373_s2 = inlined_call_operand.vmem [shape: f32[1,768], index: 2, kind: input, shape index: {}]   ;;  %s3374_s3 = inlined_call_operand.vmem [shape: f32[512,128], index: 3, kind: input, shape index: {}]   ;;  %s3375_s4 = inlined_call_operand.vmem [shape: f32[128,768], index: 4, kind: input, shape index: {}]   ;;  %s3376_s5 = inlined_call_operand.vmem [shape: f32[512,768], index: 5, kind: output, shape index: {}]  }
   0x1   :  { %3384 = sst [smem:[#allocation13_spill]] %s3372_s1 }
   0x2   :  { %3385 = sst [smem:[#allocation14_spill]] %s3375_s4 }
   0x3   :  { %3386 = sst [smem:[#allocation15_spill]] %s3376_s5 }
   0x4   :  { %s2453_s18 = smov 0   ;;  %s2455_s19 = smov 0  }
   0x5   :  { %s2457_s20 = smov 0   ;;  %s2459_s21 = smov 0  }
   0x6   :  { %s2461_s22 = smov 0   ;;  %s2463_s23 = smov 0  }
   0x7   :  { %s2465_s24 = smov 0   ;;  %s2467_s25 = smov 0  }
   0x8   :  { %s2469_s26 = smov 0   ;;  %s2471_s27 = smov 0  }
   0x9   :  { %s2473_s28 = smov 0   ;;  %s2475_s29 = smov 0  }
   0xa   :  { %s2477_s30 = smov 0  }
   0xb LB: > { %3387 = sst [smem:[#allocation6_spill]] %s2396_s24  ;;  %s27_s7 = sadd.s32 1, %s2408_s27  ;;  %s2420_s30 = sphi %s2477_s30, %s15_s30   ;;  %s2416_s29 = sphi %s2475_s29, %s3409_s29   ;;  %s2412_s28 = sphi %s2473_s28, %s3408_s28   ;;  %s2408_s27 = sphi %s2471_s27, %s3407_s27   ;;  %s2404_s26 = sphi %s2469_s26, %s3406_s26   ;;  %s2400_s25 = sphi %s2467_s25, %s3405_s25   ;;  %s2396_s24 = sphi %s2465_s24, %s3404_s24   ;;  %s2392_s23 = sphi %s2463_s23, %s3415_s23   ;;  %s2388_s22 = sphi %s2461_s22, %s3414_s22   ;;  %s2384_s21 = sphi %s2459_s21, %s3413_s21   ;;  %s2380_s20 = sphi %s2457_s20, %s3412_s20   ;;  %s2376_s19 = sphi %s2455_s19, %s3411_s19   ;;  %s2372_s18 = sphi %s2453_s18, %s3410_s18  }
   0xc   : > { %3388 = sst [smem:[#allocation7_spill]] %s2408_s27  ;;  %p28_p0 = scmp.ge.s32.totalorder %s27_s7, 2 }
   0xd   : > { %3389 = sst [smem:[#allocation8_spill]] %s2412_s28  ;;  %s30_s8 = sadd.s32 1, %s2412_s28 }
   0xe   : > { %3390 = sst [smem:[#allocation9_spill]] %s2416_s29  ;;  %s34_s9 = sadd.s32 1, %s2416_s29 }
   0xf   : > { %s69_s10 = sadd.s32 1, %s2392_s23  ;;  %s3417_s7 = smov (%p28_p0, %s27_s7), 0 }
  0x10   : > { %3391 = sst [smem:[#allocation10_spill]] %s3417_s7  ;;  %s3419_s8 = smov (!%p28_p0, %s30_s8), %s2412_s28 }
  0x11   : > { %s64_s11 = ssub.s32 %s2408_s27, %s3417_s7  ;;  %p76_p1 = scmp.ne.s32.totalorder %s2392_s23, %s2388_s22 }
  0x12   : > { %p32_p2 = scmp.ge.s32.totalorder %s3419_s8, 3  ;;  %p77_p3 = scmp.eq.s32.totalorder %s2420_s30, 0 }
  0x13   : > { %s147_s12 = sadd.s32 1, %s2384_s21  ;;  %p154_p4 = scmp.ne.s32.totalorder %s2384_s21, %s2380_s20 }
  0x14   : > { %s3421_s8 = smov (%p32_p2, %s3419_s8), 0  ;;  %s3423_s9 = smov (!%p32_p2, %s34_s9), %s2416_s29 }
  0x15   : > { %3392 = sst [smem:[#allocation11_spill]] %s3421_s8  ;;  %s65_s13 = ssub.s32 %s2412_s28, %s3421_s8 }
  0x16   : > { %p2541_p5 = por %p77_p3, %p76_p1  ;;  %p36_p6 = scmp.ge.s32.totalorder %s3423_s9, 2 }
  0x17   : > { %s66_s15 = sor.u32 %s65_s13, %s64_s11  ;;  %p145_p8 = scmp.eq.s32.totalorder %s65_s13, 0 }
  0x18   : > { %p67_p7 = scmp.eq.s32.totalorder %s66_s15, 0  ;;  %s3425_s9 = smov (%p36_p6, %s3423_s9), 0 }
  0x19   : > { %3394 = sst [smem:[#allocation12_spill]] %s3425_s9  ;;  %p2555_p9 = por %p154_p4, %p77_p3 }
  0x1a   : > { %s2548_s16 = scalar_select %p67_p7, %s2392_s23, %s69_s10  }
  0x1b   : > { %s2551_s17 = scalar_select %p145_p8, %s2384_s21, %s147_s12  }
  0x1c   : > { %s170_s8 = ssub.s32 %s2416_s29, %s3425_s9  ;;  %s175_s5 = sadd.s32 1, %s2376_s19 }
  0x1d   : > { %s172_s7 = sor.u32 %s170_s8, %s65_s13  ;;  %p185_p11 = scmp.ne.s32.totalorder %s2376_s19, %s2372_s18 }
  0x1e   : > { %p173_p10 = scmp.eq.s32.totalorder %s172_s7, 0  ;;  %s3396_s11 = sadd.s32 4294967295, %s2420_s30  }
  0x1f   : > { %p186_p12 = scmp.eq.s32.totalorder %s3396_s11, 11  ;;  %p2035_p0 = scmp.ge.s32.totalorder %s2420_s30, 12 }
  0x20   : > { %s2567_s15 = scalar_select %p173_p10, %s2376_s19, %s175_s5  }
  0x21   : > { %p2569_p13 = por %p186_p12, %p185_p11  ;;  %208 = sbr.rel (%p2035_p0) target bundleno = 108 (0x6c), region = 16 }
  0x28   : > { %221 = sbr.rel (!%p2541_p5) target bundleno = 82 (0x52), region = 24  ;;  %s223_s8 = sand.u32 (%p2541_p5), 1, %s2392_s23  }
  0x29   : > { %s2038_s7 = sshll.u32 (%p2541_p5), %s2412_s28, 1  ;;  %s2036_s10 = sshll.u32 (%p2541_p5), %s223_s8, 9 }
  0x2a   : > { %s2211_s12 = smul.u32 (%p2541_p5), 192, %s2408_s27  ;;  %s3398_s1 = sld [smem:[#allocation13_spill]] (%p2541_p5) }
  0x2b   : > { %s2587_s14 = scalar_lea.vmem (%p2541_p5), [#allocation3], %s2036_s10 }
  0x2c   : > { %s229_s13 = sadd.s32 (%p2541_p5), %s2211_s12, %s2038_s7 }
  0x2d   : > { %s2040_s5 = sshll.u32 (%p2541_p5), %s229_s13, 3 }
  0x30   : > { %s2582_s29 = scalar_lea.vmem %s3398_s1, %s2040_s5 }
  0x31   : > { %v244_v0 = vld [vmem:[%s2582_s29] sm:$0xff]  ;;  %v246_v1 = vld [vmem:[%s2582_s29 + $0x8] sm:$0xff]  ;;  %v248_v2 = vld [vmem:[%s2582_s29 + $0x30] sm:$0xff] }
  0x32   : > { %245 = vst [vmem:[%s2587_s14] sm:$0xff] %v244_v0  ;;  %247 = vst [vmem:[%s2587_s14 + $0x8] sm:$0xff] %v246_v1  ;;  %v250_v3 = vld [vmem:[%s2582_s29 + $0x38] sm:$0xff]  ;;  %v252_v4 = vld [vmem:[%s2582_s29 + $0x60] sm:$0xff] }
  0x33   : > { %249 = vst [vmem:[%s2587_s14 + $0x10] sm:$0xff] %v248_v2  ;;  %v254_v5 = vld [vmem:[%s2582_s29 + $0x68] sm:$0xff]  ;;  %251 = vst [vmem:[%s2587_s14 + $0x18] sm:$0xff] %v250_v3  ;;  %v256_v6 = vld [vmem:[%s2582_s29 + $0x90] sm:$0xff] }
  0x34   : > { %253 = vst [vmem:[%s2587_s14 + $0x20] sm:$0xff] %v252_v4  ;;  %255 = vst [vmem:[%s2587_s14 + $0x28] sm:$0xff] %v254_v5  ;;  %v258_v7 = vld [vmem:[%s2582_s29 + $0x98] sm:$0xff]  ;;  %v260_v8 = vld [vmem:[%s2582_s29 + $0xc0] sm:$0xff] }
  0x35   : > { %257 = vst [vmem:[%s2587_s14 + $0x30] sm:$0xff] %v256_v6  ;;  %259 = vst [vmem:[%s2587_s14 + $0x38] sm:$0xff] %v258_v7  ;;  %v262_v9 = vld [vmem:[%s2582_s29 + $0xc8] sm:$0xff]  ;;  %v264_v10 = vld [vmem:[%s2582_s29 + $0xf0] sm:$0xff] }
  0x36   : > { %261 = vst [vmem:[%s2587_s14 + $0x40] sm:$0xff] %v260_v8  ;;  %v266_v11 = vld [vmem:[%s2582_s29 + $0xf8] sm:$0xff]  ;;  %263 = vst [vmem:[%s2587_s14 + $0x48] sm:$0xff] %v262_v9  ;;  %v268_v12 = vld [vmem:[%s2582_s29 + $0x120] sm:$0xff] }
  0x37   : > { %265 = vst [vmem:[%s2587_s14 + $0x50] sm:$0xff] %v264_v10  ;;  %267 = vst [vmem:[%s2587_s14 + $0x58] sm:$0xff] %v266_v11  ;;  %v270_v13 = vld [vmem:[%s2582_s29 + $0x128] sm:$0xff]  ;;  %v272_v14 = vld [vmem:[%s2582_s29 + $0x150] sm:$0xff] }
  0x38   : > { %269 = vst [vmem:[%s2587_s14 + $0x60] sm:$0xff] %v268_v12  ;;  %271 = vst [vmem:[%s2587_s14 + $0x68] sm:$0xff] %v270_v13  ;;  %v274_v15 = vld [vmem:[%s2582_s29 + $0x158] sm:$0xff]  ;;  %v276_v16 = vld [vmem:[%s2582_s29 + $0x180] sm:$0xff] }
  0x39   : > { %273 = vst [vmem:[%s2587_s14 + $0x70] sm:$0xff] %v272_v14  ;;  %v278_v17 = vld [vmem:[%s2582_s29 + $0x188] sm:$0xff]  ;;  %275 = vst [vmem:[%s2587_s14 + $0x78] sm:$0xff] %v274_v15  ;;  %v280_v18 = vld [vmem:[%s2582_s29 + $0x1b0] sm:$0xff] }
  0x3a   : > { %277 = vst [vmem:[%s2587_s14 + $0x80] sm:$0xff] %v276_v16  ;;  %279 = vst [vmem:[%s2587_s14 + $0x88] sm:$0xff] %v278_v17  ;;  %v282_v19 = vld [vmem:[%s2582_s29 + $0x1b8] sm:$0xff]  ;;  %v284_v20 = vld [vmem:[%s2582_s29 + $0x1e0] sm:$0xff] }
  0x3b   : > { %281 = vst [vmem:[%s2587_s14 + $0x90] sm:$0xff] %v280_v18  ;;  %283 = vst [vmem:[%s2587_s14 + $0x98] sm:$0xff] %v282_v19  ;;  %v286_v21 = vld [vmem:[%s2582_s29 + $0x1e8] sm:$0xff]  ;;  %v288_v22 = vld [vmem:[%s2582_s29 + $0x210] sm:$0xff] }
  0x3c   : > { %285 = vst [vmem:[%s2587_s14 + $0xa0] sm:$0xff] %v284_v20  ;;  %v290_v23 = vld [vmem:[%s2582_s29 + $0x218] sm:$0xff]  ;;  %287 = vst [vmem:[%s2587_s14 + $0xa8] sm:$0xff] %v286_v21  ;;  %v292_v24 = vld [vmem:[%s2582_s29 + $0x240] sm:$0xff] }
  0x3d   : > { %289 = vst [vmem:[%s2587_s14 + $0xb0] sm:$0xff] %v288_v22  ;;  %291 = vst [vmem:[%s2587_s14 + $0xb8] sm:$0xff] %v290_v23  ;;  %v294_v25 = vld [vmem:[%s2582_s29 + $0x248] sm:$0xff]  ;;  %v296_v26 = vld [vmem:[%s2582_s29 + $0x270] sm:$0xff] }
  0x3e   : > { %293 = vst [vmem:[%s2587_s14 + $0xc0] sm:$0xff] %v292_v24  ;;  %295 = vst [vmem:[%s2587_s14 + $0xc8] sm:$0xff] %v294_v25  ;;  %v298_v27 = vld [vmem:[%s2582_s29 + $0x278] sm:$0xff]  ;;  %v300_v28 = vld [vmem:[%s2582_s29 + $0x2a0] sm:$0xff] }
  0x3f   : > { %297 = vst [vmem:[%s2587_s14 + $0xd0] sm:$0xff] %v296_v26  ;;  %v302_v29 = vld [vmem:[%s2582_s29 + $0x2a8] sm:$0xff]  ;;  %299 = vst [vmem:[%s2587_s14 + $0xd8] sm:$0xff] %v298_v27  ;;  %v304_v30 = vld [vmem:[%s2582_s29 + $0x2d0] sm:$0xff] }
  0x40   : > { %301 = vst [vmem:[%s2587_s14 + $0xe0] sm:$0xff] %v300_v28  ;;  %303 = vst [vmem:[%s2587_s14 + $0xe8] sm:$0xff] %v302_v29  ;;  %v306_v31 = vld [vmem:[%s2582_s29 + $0x2d8] sm:$0xff]  ;;  %v308_v32 = vld [vmem:[%s2582_s29 + $0x300] sm:$0xff] }
  0x41   : > { %305 = vst [vmem:[%s2587_s14 + $0xf0] sm:$0xff] %v304_v30  ;;  %307 = vst [vmem:[%s2587_s14 + $0xf8] sm:$0xff] %v306_v31  ;;  %v310_v33 = vld [vmem:[%s2582_s29 + $0x308] sm:$0xff]  ;;  %v312_v34 = vld [vmem:[%s2582_s29 + $0x330] sm:$0xff] }
  0x42   : > { %309 = vst [vmem:[%s2587_s14 + $0x100] sm:$0xff] %v308_v32  ;;  %v314_v35 = vld [vmem:[%s2582_s29 + $0x338] sm:$0xff]  ;;  %311 = vst [vmem:[%s2587_s14 + $0x108] sm:$0xff] %v310_v33  ;;  %v316_v36 = vld [vmem:[%s2582_s29 + $0x360] sm:$0xff] }
  0x43   : > { %313 = vst [vmem:[%s2587_s14 + $0x110] sm:$0xff] %v312_v34  ;;  %315 = vst [vmem:[%s2587_s14 + $0x118] sm:$0xff] %v314_v35  ;;  %v318_v37 = vld [vmem:[%s2582_s29 + $0x368] sm:$0xff]  ;;  %v320_v38 = vld [vmem:[%s2582_s29 + $0x390] sm:$0xff] }
  0x44   : > { %317 = vst [vmem:[%s2587_s14 + $0x120] sm:$0xff] %v316_v36  ;;  %319 = vst [vmem:[%s2587_s14 + $0x128] sm:$0xff] %v318_v37  ;;  %v322_v39 = vld [vmem:[%s2582_s29 + $0x398] sm:$0xff]  ;;  %v324_v40 = vld [vmem:[%s2582_s29 + $0x3c0] sm:$0xff] }
  0x45   : > { %321 = vst [vmem:[%s2587_s14 + $0x130] sm:$0xff] %v320_v38  ;;  %v326_v41 = vld [vmem:[%s2582_s29 + $0x3c8] sm:$0xff]  ;;  %323 = vst [vmem:[%s2587_s14 + $0x138] sm:$0xff] %v322_v39  ;;  %v328_v42 = vld [vmem:[%s2582_s29 + $0x3f0] sm:$0xff] }
  0x46   : > { %325 = vst [vmem:[%s2587_s14 + $0x140] sm:$0xff] %v324_v40  ;;  %327 = vst [vmem:[%s2587_s14 + $0x148] sm:$0xff] %v326_v41  ;;  %v330_v43 = vld [vmem:[%s2582_s29 + $0x3f8] sm:$0xff]  ;;  %v332_v44 = vld [vmem:[%s2582_s29 + $0x420] sm:$0xff] }
  0x47   : > { %329 = vst [vmem:[%s2587_s14 + $0x150] sm:$0xff] %v328_v42  ;;  %331 = vst [vmem:[%s2587_s14 + $0x158] sm:$0xff] %v330_v43  ;;  %v334_v45 = vld [vmem:[%s2582_s29 + $0x428] sm:$0xff]  ;;  %v336_v46 = vld [vmem:[%s2582_s29 + $0x450] sm:$0xff] }
  0x48   : > { %333 = vst [vmem:[%s2587_s14 + $0x160] sm:$0xff] %v332_v44  ;;  %v338_v47 = vld [vmem:[%s2582_s29 + $0x458] sm:$0xff]  ;;  %335 = vst [vmem:[%s2587_s14 + $0x168] sm:$0xff] %v334_v45  ;;  %v340_v48 = vld [vmem:[%s2582_s29 + $0x480] sm:$0xff] }
  0x49   : > { %337 = vst [vmem:[%s2587_s14 + $0x170] sm:$0xff] %v336_v46  ;;  %339 = vst [vmem:[%s2587_s14 + $0x178] sm:$0xff] %v338_v47  ;;  %v342_v49 = vld [vmem:[%s2582_s29 + $0x488] sm:$0xff]  ;;  %v344_v50 = vld [vmem:[%s2582_s29 + $0x4b0] sm:$0xff] }
  0x4a   : > { %341 = vst [vmem:[%s2587_s14 + $0x180] sm:$0xff] %v340_v48  ;;  %343 = vst [vmem:[%s2587_s14 + $0x188] sm:$0xff] %v342_v49  ;;  %v346_v51 = vld [vmem:[%s2582_s29 + $0x4b8] sm:$0xff]  ;;  %v348_v52 = vld [vmem:[%s2582_s29 + $0x4e0] sm:$0xff] }
  0x4b   : > { %345 = vst [vmem:[%s2587_s14 + $0x190] sm:$0xff] %v344_v50  ;;  %v350_v53 = vld [vmem:[%s2582_s29 + $0x4e8] sm:$0xff]  ;;  %347 = vst [vmem:[%s2587_s14 + $0x198] sm:$0xff] %v346_v51  ;;  %v352_v54 = vld [vmem:[%s2582_s29 + $0x510] sm:$0xff] }
  0x4c   : > { %349 = vst [vmem:[%s2587_s14 + $0x1a0] sm:$0xff] %v348_v52  ;;  %351 = vst [vmem:[%s2587_s14 + $0x1a8] sm:$0xff] %v350_v53  ;;  %v354_v55 = vld [vmem:[%s2582_s29 + $0x518] sm:$0xff]  ;;  %v356_v56 = vld [vmem:[%s2582_s29 + $0x540] sm:$0xff] }
  0x4d   : > { %353 = vst [vmem:[%s2587_s14 + $0x1b0] sm:$0xff] %v352_v54  ;;  %355 = vst [vmem:[%s2587_s14 + $0x1b8] sm:$0xff] %v354_v55  ;;  %v358_v57 = vld [vmem:[%s2582_s29 + $0x548] sm:$0xff]  ;;  %v360_v58 = vld [vmem:[%s2582_s29 + $0x570] sm:$0xff] }
  0x4e   : > { %357 = vst [vmem:[%s2587_s14 + $0x1c0] sm:$0xff] %v356_v56  ;;  %v362_v59 = vld [vmem:[%s2582_s29 + $0x578] sm:$0xff]  ;;  %359 = vst [vmem:[%s2587_s14 + $0x1c8] sm:$0xff] %v358_v57  ;;  %v364_v60 = vld [vmem:[%s2582_s29 + $0x5a0] sm:$0xff] }
  0x4f   : > { %361 = vst [vmem:[%s2587_s14 + $0x1d0] sm:$0xff] %v360_v58  ;;  %363 = vst [vmem:[%s2587_s14 + $0x1d8] sm:$0xff] %v362_v59  ;;  %v366_v61 = vld [vmem:[%s2582_s29 + $0x5a8] sm:$0xff]  ;;  %v368_v62 = vld [vmem:[%s2582_s29 + $0x5d0] sm:$0xff] }
  0x50   : > { %365 = vst [vmem:[%s2587_s14 + $0x1e0] sm:$0xff] %v364_v60  ;;  %367 = vst [vmem:[%s2587_s14 + $0x1e8] sm:$0xff] %v366_v61  ;;  %v370_v63 = vld [vmem:[%s2582_s29 + $0x5d8] sm:$0xff] }
  0x51   : > { %369 = vst [vmem:[%s2587_s14 + $0x1f0] sm:$0xff] %v368_v62  ;;  %371 = vst [vmem:[%s2587_s14 + $0x1f8] sm:$0xff] %v370_v63 }
  0x52 PF: > { %394 = sbr.rel (!%p2555_p9) target bundleno = 108 (0x6c), region = 55  ;;  %s396_s9 = sand.u32 (%p2555_p9), 1, %s2384_s21  }
  0x53   : > { %s2065_s8 = sshll.u32 (%p2555_p9), %s2412_s28, 4  ;;  %s2041_s7 = sshll.u32 (%p2555_p9), %s396_s9, 8 }
  0x54   : > { %s3399_s4 = sld [smem:[#allocation14_spill]] (%p2555_p9)  ;;  %s2726_s29 = scalar_lea.vmem (%p2555_p9), [#allocation4], %s2041_s7 }
  0x5a   : > { %s2721_s13 = scalar_lea.vmem %s3399_s4, %s2065_s8 }
  0x5b   : > { %v414_v0 = vld [vmem:[%s2721_s13] sm:$0xff]  ;;  %v416_v1 = vld [vmem:[%s2721_s13 + $0x8] sm:$0xff]  ;;  %v418_v2 = vld [vmem:[%s2721_s13 + $0x30] sm:$0xff] }
  0x5c   : > { %415 = vst [vmem:[%s2726_s29] sm:$0xff] %v414_v0  ;;  %417 = vst [vmem:[%s2726_s29 + $0x8] sm:$0xff] %v416_v1  ;;  %v420_v3 = vld [vmem:[%s2721_s13 + $0x38] sm:$0xff]  ;;  %v422_v4 = vld [vmem:[%s2721_s13 + $0x60] sm:$0xff] }
  0x5d   : > { %419 = vst [vmem:[%s2726_s29 + $0x10] sm:$0xff] %v418_v2  ;;  %v424_v5 = vld [vmem:[%s2721_s13 + $0x68] sm:$0xff]  ;;  %421 = vst [vmem:[%s2726_s29 + $0x18] sm:$0xff] %v420_v3  ;;  %v426_v6 = vld [vmem:[%s2721_s13 + $0x90] sm:$0xff] }
  0x5e   : > { %423 = vst [vmem:[%s2726_s29 + $0x20] sm:$0xff] %v422_v4  ;;  %425 = vst [vmem:[%s2726_s29 + $0x28] sm:$0xff] %v424_v5  ;;  %v428_v7 = vld [vmem:[%s2721_s13 + $0x98] sm:$0xff]  ;;  %v430_v8 = vld [vmem:[%s2721_s13 + $0xc0] sm:$0xff] }
  0x5f   : > { %427 = vst [vmem:[%s2726_s29 + $0x30] sm:$0xff] %v426_v6  ;;  %429 = vst [vmem:[%s2726_s29 + $0x38] sm:$0xff] %v428_v7  ;;  %v432_v9 = vld [vmem:[%s2721_s13 + $0xc8] sm:$0xff]  ;;  %v434_v10 = vld [vmem:[%s2721_s13 + $0xf0] sm:$0xff] }
  0x60   : > { %431 = vst [vmem:[%s2726_s29 + $0x40] sm:$0xff] %v430_v8  ;;  %v436_v11 = vld [vmem:[%s2721_s13 + $0xf8] sm:$0xff]  ;;  %433 = vst [vmem:[%s2726_s29 + $0x48] sm:$0xff] %v432_v9  ;;  %v438_v12 = vld [vmem:[%s2721_s13 + $0x120] sm:$0xff] }
  0x61   : > { %435 = vst [vmem:[%s2726_s29 + $0x50] sm:$0xff] %v434_v10  ;;  %437 = vst [vmem:[%s2726_s29 + $0x58] sm:$0xff] %v436_v11  ;;  %v440_v13 = vld [vmem:[%s2721_s13 + $0x128] sm:$0xff]  ;;  %v442_v14 = vld [vmem:[%s2721_s13 + $0x150] sm:$0xff] }
  0x62   : > { %439 = vst [vmem:[%s2726_s29 + $0x60] sm:$0xff] %v438_v12  ;;  %441 = vst [vmem:[%s2726_s29 + $0x68] sm:$0xff] %v440_v13  ;;  %v444_v15 = vld [vmem:[%s2721_s13 + $0x158] sm:$0xff]  ;;  %v446_v16 = vld [vmem:[%s2721_s13 + $0x180] sm:$0xff] }
  0x63   : > { %443 = vst [vmem:[%s2726_s29 + $0x70] sm:$0xff] %v442_v14  ;;  %v448_v17 = vld [vmem:[%s2721_s13 + $0x188] sm:$0xff]  ;;  %445 = vst [vmem:[%s2726_s29 + $0x78] sm:$0xff] %v444_v15  ;;  %v450_v18 = vld [vmem:[%s2721_s13 + $0x1b0] sm:$0xff] }
  0x64   : > { %447 = vst [vmem:[%s2726_s29 + $0x80] sm:$0xff] %v446_v16  ;;  %449 = vst [vmem:[%s2726_s29 + $0x88] sm:$0xff] %v448_v17  ;;  %v452_v19 = vld [vmem:[%s2721_s13 + $0x1b8] sm:$0xff]  ;;  %v454_v20 = vld [vmem:[%s2721_s13 + $0x1e0] sm:$0xff] }
  0x65   : > { %451 = vst [vmem:[%s2726_s29 + $0x90] sm:$0xff] %v450_v18  ;;  %453 = vst [vmem:[%s2726_s29 + $0x98] sm:$0xff] %v452_v19  ;;  %v456_v21 = vld [vmem:[%s2721_s13 + $0x1e8] sm:$0xff]  ;;  %v458_v22 = vld [vmem:[%s2721_s13 + $0x210] sm:$0xff] }
  0x66   : > { %455 = vst [vmem:[%s2726_s29 + $0xa0] sm:$0xff] %v454_v20  ;;  %v460_v23 = vld [vmem:[%s2721_s13 + $0x218] sm:$0xff]  ;;  %457 = vst [vmem:[%s2726_s29 + $0xa8] sm:$0xff] %v456_v21  ;;  %v462_v24 = vld [vmem:[%s2721_s13 + $0x240] sm:$0xff] }
  0x67   : > { %459 = vst [vmem:[%s2726_s29 + $0xb0] sm:$0xff] %v458_v22  ;;  %461 = vst [vmem:[%s2726_s29 + $0xb8] sm:$0xff] %v460_v23  ;;  %v464_v25 = vld [vmem:[%s2721_s13 + $0x248] sm:$0xff]  ;;  %v466_v26 = vld [vmem:[%s2721_s13 + $0x270] sm:$0xff] }
  0x68   : > { %463 = vst [vmem:[%s2726_s29 + $0xc0] sm:$0xff] %v462_v24  ;;  %465 = vst [vmem:[%s2726_s29 + $0xc8] sm:$0xff] %v464_v25  ;;  %v468_v27 = vld [vmem:[%s2721_s13 + $0x278] sm:$0xff]  ;;  %v470_v28 = vld [vmem:[%s2721_s13 + $0x2a0] sm:$0xff] }
  0x69   : > { %467 = vst [vmem:[%s2726_s29 + $0xd0] sm:$0xff] %v466_v26  ;;  %v472_v29 = vld [vmem:[%s2721_s13 + $0x2a8] sm:$0xff]  ;;  %469 = vst [vmem:[%s2726_s29 + $0xd8] sm:$0xff] %v468_v27  ;;  %v474_v30 = vld [vmem:[%s2721_s13 + $0x2d0] sm:$0xff] }
  0x6a   : > { %471 = vst [vmem:[%s2726_s29 + $0xe0] sm:$0xff] %v470_v28  ;;  %473 = vst [vmem:[%s2726_s29 + $0xe8] sm:$0xff] %v472_v29  ;;  %v476_v31 = vld [vmem:[%s2721_s13 + $0x2d8] sm:$0xff] }
  0x6b   : > { %475 = vst [vmem:[%s2726_s29 + $0xf0] sm:$0xff] %v474_v30  ;;  %477 = vst [vmem:[%s2726_s29 + $0xf8] sm:$0xff] %v476_v31 }
  0x6c PF: > { %p2044_p1 = scmp.ge.s32.totalorder %s2420_s30, 1  ;;  %p482_p2 = scmp.lt.s32.totalorder %s2420_s30, 13 }
  0x6e   : > { %p483_p3 = pnand %p2044_p1, %p482_p2 }
  0x6f   : > { %s489_s6 = sand.u32 (!%p483_p3), 1, %s2388_s22   ;;  %s496_s5 = sand.u32 (!%p483_p3), 1, %s2380_s20  }
  0x70   : > { %486 = sbr.rel (%p483_p3) target bundleno = 844 (0x34c), region = 78  ;;  %s2045_s11 = sshll.u32 (!%p483_p3), %s489_s6, 9 }
  0x71   : > { %s2046_s14 = sshll.u32 (!%p483_p3), %s496_s5, 8  ;;  %s538_s9 = sand.u32 (!%p483_p3), 1, %s2372_s18  }
  0x72   : > { %s2048_s8 = sshll.u32 (!%p483_p3), %s2404_s26, 5  ;;  %s2047_s7 = sshll.u32 (!%p483_p3), %s538_s9, 9 }
  0x73   : > { %p542_p4 = scmp.lt.s32.totalorder (!%p483_p3), %s2048_s8, 63  ;;  %s2796_s10 = sshll.u32 (!%p483_p3), %s2400_s25, 1 }
  0x74   : > { %p551_p5 = scmp.lt.s32.totalorder (!%p483_p3), %s2796_s10, 5  ;;  %s2816_s28 = scalar_lea.vmem (!%p483_p3), [#allocation3], %s2045_s11 }
  0x75   : > { %s2820_s27 = scalar_lea.vmem (!%p483_p3), [#allocation5], %s2047_s7  ;;  %s3400_s1 = sld [smem:[#allocation6_spill]] (!%p483_p3) }
  0x77   : > { %s3427_s8 = smov (!%p542_p4, %s2048_s8), 63 }
  0x78   : > { %s2066_s12 = sshll.u32 %s3427_s8, 5  ;;  %s2053_s13 = sshll.u32 %s3427_s8, 3 }
  0x79   : > { %s2802_s4 = scalar_lea.vmem %s3371_s0, %s2066_s12  ;;  %s2807_s18 = scalar_lea.vmem %s3374_s3, %s2053_s13 }
  0x7a   : > { %s2810_s6 = scalar_select %p551_p5, %s2796_s10, 5 }
  0x7b   : > { %s2818_s8 = scalar_lea.vmem [#allocation4], %s2046_s14  ;;  %p2054_p6 = scmp.ne.s32.totalorder %s3400_s1, 0 }
  0x7c   : > { %s553_s9 = scalar_lea.vmem %s3373_s2, %s2810_s6  ;;  %v601_v32 = vld [vmem:[%s2818_s8 + $0x8] sm:$0xff] (!%p2054_p6)  ;;  %v603_v33 = vld [vmem:[%s2818_s8 + $0x18] sm:$0xff] (!%p2054_p6)  ;;  %v600_v34 = vld [vmem:[%s2818_s8] sm:$0xff] (!%p2054_p6)  ;;  %v2422_v39 = vmov (!%p2054_p6), 0.0  }
  0x7d   : > { %567 = sbr.rel (%p2054_p6) target bundleno = 433 (0x1b1), region = 90  ;;  %v2067_v35 = vpack.c.bf16 (!%p2054_p6), %v603_v33, %v601_v32  ;;  %v602_v36 = vld [vmem:[%s2818_s8 + $0x10] sm:$0xff] (!%p2054_p6)  ;;  %v605_v37 = vld [vmem:[%s2818_s8 + $0x28] sm:$0xff] (!%p2054_p6)  ;;  %v607_v38 = vld [vmem:[%s2818_s8 + $0x38] sm:$0xff] (!%p2054_p6)  ;;  %696 = vmatprep.mubr.f32.mxu0 (!%p2054_p6), %v2422_v39  ;;  %792 = vmatprep.mubr.f32.mxu1 (!%p2054_p6), %v2422_v39 }
  0x7e   : > { %v2069_v40 = vpack.c.bf16 (!%p2054_p6), %v602_v36, %v600_v34  ;;  %v2071_v41 = vpack.c.bf16 (!%p2054_p6), %v607_v38, %v605_v37  ;;  %v604_v42 = vld [vmem:[%s2818_s8 + $0x20] sm:$0xff] (!%p2054_p6)  ;;  %v606_v43 = vld [vmem:[%s2818_s8 + $0x30] sm:$0xff] (!%p2054_p6)  ;;  %v609_v44 = vld [vmem:[%s2818_s8 + $0x48] sm:$0xff] (!%p2054_p6) }
  0x7f   : > { %2068 = vmatprep.subr.bf16.mxu0 (!%p2054_p6), %v2067_v35  ;;  %2163 = vmatprep.subr.bf16.mxu1 (!%p2054_p6), %v2067_v35  ;;  %v611_v45 = vld [vmem:[%s2818_s8 + $0x58] sm:$0xff] (!%p2054_p6)  ;;  %v2073_v46 = vpack.c.bf16 (!%p2054_p6), %v606_v43, %v604_v42  ;;  %v608_v48 = vld [vmem:[%s2818_s8 + $0x40] sm:$0xff] (!%p2054_p6)  ;;  %v610_v49 = vld [vmem:[%s2818_s8 + $0x50] sm:$0xff] (!%p2054_p6) }
  0x80   : > { %2070 = vmatpush1.bf16.msra.mxu0 (!%p2054_p6), %v2069_v40  ;;  %2171 = vmatpush1.bf16.msra.mxu1 (!%p2054_p6), %v2069_v40  ;;  %v2075_v47 = vpack.c.bf16 (!%p2054_p6), %v611_v45, %v609_v44  ;;  %v613_v50 = vld [vmem:[%s2818_s8 + $0x68] sm:$0xff] (!%p2054_p6)  ;;  %v615_v51 = vld [vmem:[%s2818_s8 + $0x78] sm:$0xff] (!%p2054_p6)  ;;  %v2077_v52 = vpack.c.bf16 (!%p2054_p6), %v610_v49, %v608_v48  ;;  %v612_v54 = vld [vmem:[%s2818_s8 + $0x60] sm:$0xff] (!%p2054_p6) }
  0x81   : > { %2072 = vmatprep.subr.bf16.mxu0 (!%p2054_p6), %v2071_v41  ;;  %2164 = vmatprep.subr.bf16.mxu1 (!%p2054_p6), %v2071_v41  ;;  %v2079_v53 = vpack.c.bf16 (!%p2054_p6), %v615_v51, %v613_v50  ;;  %v614_v55 = vld [vmem:[%s2818_s8 + $0x70] sm:$0xff] (!%p2054_p6)  ;;  %v617_v56 = vld [vmem:[%s2818_s8 + $0x88] sm:$0xff] (!%p2054_p6)  ;;  %v619_v57 = vld [vmem:[%s2818_s8 + $0x98] sm:$0xff] (!%p2054_p6) }
  0x82   : > { %v2081_v58 = vpack.c.bf16 (!%p2054_p6), %v614_v55, %v612_v54  ;;  %v2083_v59 = vpack.c.bf16 (!%p2054_p6), %v619_v57, %v617_v56  ;;  %v616_v60 = vld [vmem:[%s2818_s8 + $0x80] sm:$0xff] (!%p2054_p6)  ;;  %v618_v61 = vld [vmem:[%s2818_s8 + $0x90] sm:$0xff] (!%p2054_p6)  ;;  %v621_v62 = vld [vmem:[%s2818_s8 + $0xa8] sm:$0xff] (!%p2054_p6) }
  0x83   : > { %v623_v63 = vld [vmem:[%s2818_s8 + $0xb8] sm:$0xff] (!%p2054_p6)  ;;  %v2085_v0 = vpack.c.bf16 (!%p2054_p6), %v618_v61, %v616_v60  ;;  %v620_v2 = vld [vmem:[%s2818_s8 + $0xa0] sm:$0xff] (!%p2054_p6)  ;;  %v622_v3 = vld [vmem:[%s2818_s8 + $0xb0] sm:$0xff] (!%p2054_p6) }
  0x84   : > { %2074 = vmatpush1.bf16.msra.mxu0 %v2073_v46  ;;  %2172 = vmatpush1.bf16.msra.mxu1 %v2073_v46  ;;  %v2087_v1 = vpack.c.bf16 %v623_v63, %v621_v62  ;;  %v625_v4 = vld [vmem:[%s2818_s8 + $0xc8] sm:$0xff]  ;;  %v627_v5 = vld [vmem:[%s2818_s8 + $0xd8] sm:$0xff]  ;;  %v2089_v6 = vpack.c.bf16 %v622_v3, %v620_v2  ;;  %v624_v8 = vld [vmem:[%s2818_s8 + $0xc0] sm:$0xff] }
  0x85   : > { %2076 = vmatprep.subr.bf16.mxu0 %v2075_v47  ;;  %2165 = vmatprep.subr.bf16.mxu1 %v2075_v47  ;;  %v2091_v7 = vpack.c.bf16 %v627_v5, %v625_v4  ;;  %v626_v9 = vld [vmem:[%s2818_s8 + $0xd0] sm:$0xff]  ;;  %v629_v10 = vld [vmem:[%s2818_s8 + $0xe8] sm:$0xff]  ;;  %v631_v11 = vld [vmem:[%s2818_s8 + $0xf8] sm:$0xff] }
  0x86   : > { %v2093_v12 = vpack.c.bf16 %v626_v9, %v624_v8  ;;  %v2095_v13 = vpack.c.bf16 %v631_v11, %v629_v10  ;;  %v628_v14 = vld [vmem:[%s2818_s8 + $0xe0] sm:$0xff]  ;;  %v630_v15 = vld [vmem:[%s2818_s8 + $0xf0] sm:$0xff]  ;;  %v569_v19 = vld [vmem:[%s2807_s18 + $0x8] sm:$0xff] }
  0x87   : > { %v2097_v16 = vpack.c.bf16 %v630_v15, %v628_v14  ;;  %v568_v17 = vld [vmem:[%s2807_s18] sm:$0xff]  ;;  %v585_v20 = vld [vmem:[%s2807_s18 + $0x88] sm:$0xff]  ;;  %v570_v21 = vld [vmem:[%s2807_s18 + $0x10] sm:$0xff] }
  0x88   : > { %2078 = vmatpush1.bf16.msra.mxu0 %v2077_v52  ;;  %2173 = vmatpush1.bf16.msra.mxu1 %v2077_v52  ;;  %v584_v18 = vld [vmem:[%s2807_s18 + $0x80] sm:$0xff]  ;;  %v586_v22 = vld [vmem:[%s2807_s18 + $0x90] sm:$0xff]  ;;  %v571_v23 = vld [vmem:[%s2807_s18 + $0x18] sm:$0xff] }
  0x89   : > { %2080 = vmatprep.subr.bf16.mxu0 %v2079_v53  ;;  %2166 = vmatprep.subr.bf16.mxu1 %v2079_v53  ;;  %v587_v24 = vld [vmem:[%s2807_s18 + $0x98] sm:$0xff]  ;;  %v572_v25 = vld [vmem:[%s2807_s18 + $0x20] sm:$0xff]  ;;  %v573_v27 = vld [vmem:[%s2807_s18 + $0x28] sm:$0xff] }
  0x8a   : > { %v588_v26 = vld [vmem:[%s2807_s18 + $0xa0] sm:$0xff]  ;;  %v589_v28 = vld [vmem:[%s2807_s18 + $0xa8] sm:$0xff]  ;;  %v574_v29 = vld [vmem:[%s2807_s18 + $0x30] sm:$0xff] }
  0x8b   : > { %v590_v30 = vld [vmem:[%s2807_s18 + $0xb0] sm:$0xff]  ;;  %v575_v31 = vld [vmem:[%s2807_s18 + $0x38] sm:$0xff]  ;;  %v576_v33 = vld [vmem:[%s2807_s18 + $0x40] sm:$0xff] }
  0x8c   : > { %2082 = vmatpush1.bf16.msra.mxu0 %v2081_v58  ;;  %2174 = vmatpush1.bf16.msra.mxu1 %v2081_v58  ;;  %v591_v32 = vld [vmem:[%s2807_s18 + $0xb8] sm:$0xff]  ;;  %v592_v34 = vld [vmem:[%s2807_s18 + $0xc0] sm:$0xff]  ;;  %v577_v35 = vld [vmem:[%s2807_s18 + $0x48] sm:$0xff] }
  0x8d   : > { %2084 = vmatprep.subr.bf16.mxu0 %v2083_v59  ;;  %2167 = vmatprep.subr.bf16.mxu1 %v2083_v59  ;;  %v593_v36 = vld [vmem:[%s2807_s18 + $0xc8] sm:$0xff]  ;;  %v578_v37 = vld [vmem:[%s2807_s18 + $0x50] sm:$0xff]  ;;  %v579_v40 = vld [vmem:[%s2807_s18 + $0x58] sm:$0xff] }
  0x8e   : > { %v594_v38 = vld [vmem:[%s2807_s18 + $0xd0] sm:$0xff]  ;;  %v595_v41 = vld [vmem:[%s2807_s18 + $0xd8] sm:$0xff]  ;;  %v580_v42 = vld [vmem:[%s2807_s18 + $0x60] sm:$0xff] }
  0x8f   : > { %v596_v43 = vld [vmem:[%s2807_s18 + $0xe0] sm:$0xff]  ;;  %v581_v44 = vld [vmem:[%s2807_s18 + $0x68] sm:$0xff]  ;;  %v582_v46 = vld [vmem:[%s2807_s18 + $0x70] sm:$0xff] }
  0x90   : > { %2086 = vmatpush1.bf16.msra.mxu0 %v2085_v0  ;;  %2175 = vmatpush1.bf16.msra.mxu1 %v2085_v0  ;;  %v597_v45 = vld [vmem:[%s2807_s18 + $0xe8] sm:$0xff]  ;;  %v598_v47 = vld [vmem:[%s2807_s18 + $0xf0] sm:$0xff]  ;;  %v583_v48 = vld [vmem:[%s2807_s18 + $0x78] sm:$0xff] }
  0x91   : > { %2088 = vmatprep.subr.bf16.mxu0 %v2087_v1  ;;  %2168 = vmatprep.subr.bf16.mxu1 %v2087_v1  ;;  %v599_v49 = vld [vmem:[%s2807_s18 + $0xf8] sm:$0xff] }
  0x94   : > { %2090 = vmatpush1.bf16.msra.mxu0 %v2089_v6  ;;  %2176 = vmatpush1.bf16.msra.mxu1 %v2089_v6 }
  0x95   : > { %2092 = vmatprep.subr.bf16.mxu0 %v2091_v7  ;;  %2169 = vmatprep.subr.bf16.mxu1 %v2091_v7 }
  0x98   : > { %2094 = vmatpush1.bf16.msra.mxu0 %v2093_v12  ;;  %2177 = vmatpush1.bf16.msra.mxu1 %v2093_v12 }
  0x99   : > { %2096 = vmatprep.subr.bf16.mxu0 %v2095_v13  ;;  %2170 = vmatprep.subr.bf16.mxu1 %v2095_v13 }
  0x9c   : > { %2098 = vmatpush1.bf16.msra.mxu0 %v2097_v16  ;;  %2178 = vmatpush1.bf16.msra.mxu1 %v2097_v16 }
  0x9f   : > { %697 = vmatmul.mubr.f32.vlgmr.msra.gmra.mrb[0].mxu0 %v568_v17  ;;  %793 = vmatmul.mubr.f32.vlgmr.msra.gmra.mrb[0].mxu1 %v584_v18 }
  0xa0   : > { %702 = vmatprep.mubr.f32.mxu0 %v2422_v39  ;;  %798 = vmatprep.mubr.f32.mxu1 %v2422_v39 }
  0xa3   : > { %703 = vmatmul.mubr.f32.gmra.mrb[2].mxu0 %v569_v19  ;;  %799 = vmatmul.mubr.f32.gmra.mrb[2].mxu1 %v585_v20 }
  0xa4   : > { %708 = vmatprep.mubr.f32.mxu0 %v2422_v39  ;;  %804 = vmatprep.mubr.f32.mxu1 %v2422_v39 }
  0xa7   : > { %709 = vmatmul.mubr.f32.gmra.mrb[4].mxu0 %v570_v21  ;;  %805 = vmatmul.mubr.f32.gmra.mrb[4].mxu1 %v586_v22 }
  0xa8   : > { %714 = vmatprep.mubr.f32.mxu0 %v2422_v39  ;;  %810 = vmatprep.mubr.f32.mxu1 %v2422_v39 }
  0xab   : > { %715 = vmatmul.mubr.f32.gmra.mrb[6].mxu0 %v571_v23  ;;  %811 = vmatmul.mubr.f32.gmra.mrb[6].mxu1 %v587_v24 }
  0xac   : > { %720 = vmatprep.mubr.f32.mxu0 %v2422_v39  ;;  %816 = vmatprep.mubr.f32.mxu1 %v2422_v39 }
  0xaf   : > { %721 = vmatmul.mubr.f32.gmra.mrb[8].mxu0 %v572_v25  ;;  %817 = vmatmul.mubr.f32.gmra.mrb[8].mxu1 %v588_v26 }
  0xb0   : > { %726 = vmatprep.mubr.f32.mxu0 %v2422_v39  ;;  %822 = vmatprep.mubr.f32.mxu1 %v2422_v39 }
  0xb3   : > { %727 = vmatmul.mubr.f32.gmra.mrb[10].mxu0 %v573_v27  ;;  %823 = vmatmul.mubr.f32.gmra.mrb[10].mxu1 %v589_v28 }
  0xb4   : > { %732 = vmatprep.mubr.f32.mxu0 %v2422_v39  ;;  %828 = vmatprep.mubr.f32.mxu1 %v2422_v39 }
  0xb7   : > { %733 = vmatmul.mubr.f32.gmra.mrb[12].mxu0 %v574_v29  ;;  %829 = vmatmul.mubr.f32.gmra.mrb[12].mxu1 %v590_v30 }
  0xb8   : > { %738 = vmatprep.mubr.f32.mxu0 %v2422_v39  ;;  %834 = vmatprep.mubr.f32.mxu1 %v2422_v39 }
  0xbb   : > { %739 = vmatmul.mubr.f32.gmra.mrb[14].mxu0 %v575_v31  ;;  %835 = vmatmul.mubr.f32.gmra.mrb[14].mxu1 %v591_v32 }
  0xbc   : > { %744 = vmatprep.mubr.f32.mxu0 %v2422_v39  ;;  %840 = vmatprep.mubr.f32.mxu1 %v2422_v39 }
  0xbf   : > { %745 = vmatmul.mubr.f32.gmra.mrb[16].mxu0 %v576_v33  ;;  %841 = vmatmul.mubr.f32.gmra.mrb[16].mxu1 %v592_v34 }
  0xc0   : > { %750 = vmatprep.mubr.f32.mxu0 %v2422_v39  ;;  %846 = vmatprep.mubr.f32.mxu1 %v2422_v39 }
  0xc3   : > { %751 = vmatmul.mubr.f32.gmra.mrb[18].mxu0 %v577_v35  ;;  %847 = vmatmul.mubr.f32.gmra.mrb[18].mxu1 %v593_v36 }
  0xc4   : > { %756 = vmatprep.mubr.f32.mxu0 %v2422_v39  ;;  %852 = vmatprep.mubr.f32.mxu1 %v2422_v39 }
  0xc7   : > { %757 = vmatmul.mubr.f32.gmra.mrb[20].mxu0 %v578_v37  ;;  %853 = vmatmul.mubr.f32.gmra.mrb[20].mxu1 %v594_v38 }
  0xc8   : > { %762 = vmatprep.mubr.f32.mxu0 %v2422_v39  ;;  %858 = vmatprep.mubr.f32.mxu1 %v2422_v39 }
  0xcb   : > { %763 = vmatmul.mubr.f32.gmra.mrb[22].mxu0 %v579_v40  ;;  %859 = vmatmul.mubr.f32.gmra.mrb[22].mxu1 %v595_v41 }
  0xcc   : > { %768 = vmatprep.mubr.f32.mxu0 %v2422_v39  ;;  %864 = vmatprep.mubr.f32.mxu1 %v2422_v39 }
  0xcf   : > { %769 = vmatmul.mubr.f32.gmra.mrb[24].mxu0 %v580_v42  ;;  %865 = vmatmul.mubr.f32.gmra.mrb[24].mxu1 %v596_v43 }
  0xd0   : > { %774 = vmatprep.mubr.f32.mxu0 %v2422_v39  ;;  %870 = vmatprep.mubr.f32.mxu1 %v2422_v39 }
  0xd3   : > { %775 = vmatmul.mubr.f32.gmra.mrb[26].mxu0 %v581_v44  ;;  %871 = vmatmul.mubr.f32.gmra.mrb[26].mxu1 %v597_v45 }
  0xd4   : > { %780 = vmatprep.mubr.f32.mxu0 %v2422_v39  ;;  %876 = vmatprep.mubr.f32.mxu1 %v2422_v39 }
  0xd7   : > { %781 = vmatmul.mubr.f32.gmra.mrb[28].mxu0 %v582_v46  ;;  %877 = vmatmul.mubr.f32.gmra.mrb[28].mxu1 %v598_v47 }
  0xd8   : > { %786 = vmatprep.mubr.f32.mxu0 %v2422_v39  ;;  %882 = vmatprep.mubr.f32.mxu1 %v2422_v39 }
  0xdb   : > { %787 = vmatmul.mubr.f32.gmra.mrb[30].mxu0 %v583_v48  ;;  %883 = vmatmul.mubr.f32.gmra.mrb[30].mxu1 %v599_v49 }
 0x172   : > { %v698_v50 = vpop.f32.mrb[0].mxu0  ;;  %v794_v51 = vpop.f32.mrb[0].mxu1 }
 0x173   : > { %889 = vst [vmem:[#allocation2] sm:$0xff] %v698_v50  ;;  %921 = vst [vmem:[#allocation2 + $0x100] sm:$0xff] %v794_v51  ;;  %v700_v52 = vpop.f32.mrb[1].mxu0  ;;  %v796_v53 = vpop.f32.mrb[1].mxu1 }
 0x174   : > { %890 = vst [vmem:[#allocation2 + $0x8] sm:$0xff] %v700_v52  ;;  %922 = vst [vmem:[#allocation2 + $0x108] sm:$0xff] %v796_v53 }
 0x176   : > { %v704_v54 = vpop.f32.mrb[2].mxu0  ;;  %v800_v55 = vpop.f32.mrb[2].mxu1 }
 0x177   : > { %891 = vst [vmem:[#allocation2 + $0x10] sm:$0xff] %v704_v54  ;;  %923 = vst [vmem:[#allocation2 + $0x110] sm:$0xff] %v800_v55  ;;  %v706_v56 = vpop.f32.mrb[3].mxu0  ;;  %v802_v57 = vpop.f32.mrb[3].mxu1 }
 0x178   : > { %892 = vst [vmem:[#allocation2 + $0x18] sm:$0xff] %v706_v56  ;;  %924 = vst [vmem:[#allocation2 + $0x118] sm:$0xff] %v802_v57 }
 0x17a   : > { %v710_v39 = vpop.f32.mrb[4].mxu0  ;;  %v806_v58 = vpop.f32.mrb[4].mxu1 }
 0x17b   : > { %893 = vst [vmem:[#allocation2 + $0x20] sm:$0xff] %v710_v39  ;;  %925 = vst [vmem:[#allocation2 + $0x120] sm:$0xff] %v806_v58  ;;  %v712_v59 = vpop.f32.mrb[5].mxu0  ;;  %v808_v60 = vpop.f32.mrb[5].mxu1 }
 0x17c   : > { %894 = vst [vmem:[#allocation2 + $0x28] sm:$0xff] %v712_v59  ;;  %926 = vst [vmem:[#allocation2 + $0x128] sm:$0xff] %v808_v60 }
 0x17e   : > { %v716_v61 = vpop.f32.mrb[6].mxu0  ;;  %v812_v62 = vpop.f32.mrb[6].mxu1 }
 0x17f   : > { %895 = vst [vmem:[#allocation2 + $0x30] sm:$0xff] %v716_v61  ;;  %927 = vst [vmem:[#allocation2 + $0x130] sm:$0xff] %v812_v62  ;;  %v718_v63 = vpop.f32.mrb[7].mxu0  ;;  %v814_v0 = vpop.f32.mrb[7].mxu1 }
 0x180   : > { %896 = vst [vmem:[#allocation2 + $0x38] sm:$0xff] %v718_v63  ;;  %928 = vst [vmem:[#allocation2 + $0x138] sm:$0xff] %v814_v0 }
 0x182   : > { %v722_v1 = vpop.f32.mrb[8].mxu0  ;;  %v818_v2 = vpop.f32.mrb[8].mxu1 }
 0x183   : > { %897 = vst [vmem:[#allocation2 + $0x40] sm:$0xff] %v722_v1  ;;  %929 = vst [vmem:[#allocation2 + $0x140] sm:$0xff] %v818_v2  ;;  %v724_v3 = vpop.f32.mrb[9].mxu0  ;;  %v820_v4 = vpop.f32.mrb[9].mxu1 }
 0x184   : > { %898 = vst [vmem:[#allocation2 + $0x48] sm:$0xff] %v724_v3  ;;  %930 = vst [vmem:[#allocation2 + $0x148] sm:$0xff] %v820_v4 }
 0x186   : > { %v728_v5 = vpop.f32.mrb[10].mxu0  ;;  %v824_v6 = vpop.f32.mrb[10].mxu1 }
 0x187   : > { %899 = vst [vmem:[#allocation2 + $0x50] sm:$0xff] %v728_v5  ;;  %931 = vst [vmem:[#allocation2 + $0x150] sm:$0xff] %v824_v6  ;;  %v730_v7 = vpop.f32.mrb[11].mxu0  ;;  %v826_v8 = vpop.f32.mrb[11].mxu1 }
 0x188   : > { %900 = vst [vmem:[#allocation2 + $0x58] sm:$0xff] %v730_v7  ;;  %932 = vst [vmem:[#allocation2 + $0x158] sm:$0xff] %v826_v8 }
 0x18a   : > { %v734_v9 = vpop.f32.mrb[12].mxu0  ;;  %v830_v10 = vpop.f32.mrb[12].mxu1 }
 0x18b   : > { %901 = vst [vmem:[#allocation2 + $0x60] sm:$0xff] %v734_v9  ;;  %933 = vst [vmem:[#allocation2 + $0x160] sm:$0xff] %v830_v10  ;;  %v736_v11 = vpop.f32.mrb[13].mxu0  ;;  %v832_v12 = vpop.f32.mrb[13].mxu1 }
 0x18c   : > { %902 = vst [vmem:[#allocation2 + $0x68] sm:$0xff] %v736_v11  ;;  %934 = vst [vmem:[#allocation2 + $0x168] sm:$0xff] %v832_v12 }
 0x18e   : > { %v740_v13 = vpop.f32.mrb[14].mxu0  ;;  %v836_v14 = vpop.f32.mrb[14].mxu1 }
 0x18f   : > { %903 = vst [vmem:[#allocation2 + $0x70] sm:$0xff] %v740_v13  ;;  %935 = vst [vmem:[#allocation2 + $0x170] sm:$0xff] %v836_v14  ;;  %v742_v15 = vpop.f32.mrb[15].mxu0  ;;  %v838_v16 = vpop.f32.mrb[15].mxu1 }
 0x190   : > { %904 = vst [vmem:[#allocation2 + $0x78] sm:$0xff] %v742_v15  ;;  %936 = vst [vmem:[#allocation2 + $0x178] sm:$0xff] %v838_v16 }
 0x192   : > { %v746_v17 = vpop.f32.mrb[16].mxu0  ;;  %v842_v18 = vpop.f32.mrb[16].mxu1 }
 0x193   : > { %905 = vst [vmem:[#allocation2 + $0x80] sm:$0xff] %v746_v17  ;;  %937 = vst [vmem:[#allocation2 + $0x180] sm:$0xff] %v842_v18  ;;  %v748_v19 = vpop.f32.mrb[17].mxu0  ;;  %v844_v20 = vpop.f32.mrb[17].mxu1 }
 0x194   : > { %906 = vst [vmem:[#allocation2 + $0x88] sm:$0xff] %v748_v19  ;;  %938 = vst [vmem:[#allocation2 + $0x188] sm:$0xff] %v844_v20 }
 0x196   : > { %v752_v21 = vpop.f32.mrb[18].mxu0  ;;  %v848_v22 = vpop.f32.mrb[18].mxu1 }
 0x197   : > { %907 = vst [vmem:[#allocation2 + $0x90] sm:$0xff] %v752_v21  ;;  %939 = vst [vmem:[#allocation2 + $0x190] sm:$0xff] %v848_v22  ;;  %v754_v23 = vpop.f32.mrb[19].mxu0  ;;  %v850_v24 = vpop.f32.mrb[19].mxu1 }
 0x198   : > { %908 = vst [vmem:[#allocation2 + $0x98] sm:$0xff] %v754_v23  ;;  %940 = vst [vmem:[#allocation2 + $0x198] sm:$0xff] %v850_v24 }
 0x19a   : > { %v758_v25 = vpop.f32.mrb[20].mxu0  ;;  %v854_v26 = vpop.f32.mrb[20].mxu1 }
 0x19b   : > { %909 = vst [vmem:[#allocation2 + $0xa0] sm:$0xff] %v758_v25  ;;  %941 = vst [vmem:[#allocation2 + $0x1a0] sm:$0xff] %v854_v26  ;;  %v760_v27 = vpop.f32.mrb[21].mxu0  ;;  %v856_v28 = vpop.f32.mrb[21].mxu1 }
 0x19c   : > { %910 = vst [vmem:[#allocation2 + $0xa8] sm:$0xff] %v760_v27  ;;  %942 = vst [vmem:[#allocation2 + $0x1a8] sm:$0xff] %v856_v28 }
 0x19e   : > { %v764_v29 = vpop.f32.mrb[22].mxu0  ;;  %v860_v30 = vpop.f32.mrb[22].mxu1 }
 0x19f   : > { %911 = vst [vmem:[#allocation2 + $0xb0] sm:$0xff] %v764_v29  ;;  %943 = vst [vmem:[#allocation2 + $0x1b0] sm:$0xff] %v860_v30  ;;  %v766_v31 = vpop.f32.mrb[23].mxu0  ;;  %v862_v32 = vpop.f32.mrb[23].mxu1 }
 0x1a0   : > { %912 = vst [vmem:[#allocation2 + $0xb8] sm:$0xff] %v766_v31  ;;  %944 = vst [vmem:[#allocation2 + $0x1b8] sm:$0xff] %v862_v32 }
 0x1a2   : > { %v770_v33 = vpop.f32.mrb[24].mxu0  ;;  %v866_v34 = vpop.f32.mrb[24].mxu1 }
 0x1a3   : > { %913 = vst [vmem:[#allocation2 + $0xc0] sm:$0xff] %v770_v33  ;;  %945 = vst [vmem:[#allocation2 + $0x1c0] sm:$0xff] %v866_v34  ;;  %v772_v35 = vpop.f32.mrb[25].mxu0  ;;  %v868_v36 = vpop.f32.mrb[25].mxu1 }
 0x1a4   : > { %914 = vst [vmem:[#allocation2 + $0xc8] sm:$0xff] %v772_v35  ;;  %946 = vst [vmem:[#allocation2 + $0x1c8] sm:$0xff] %v868_v36 }
 0x1a6   : > { %v776_v37 = vpop.f32.mrb[26].mxu0  ;;  %v872_v38 = vpop.f32.mrb[26].mxu1 }
 0x1a7   : > { %915 = vst [vmem:[#allocation2 + $0xd0] sm:$0xff] %v776_v37  ;;  %947 = vst [vmem:[#allocation2 + $0x1d0] sm:$0xff] %v872_v38  ;;  %v778_v40 = vpop.f32.mrb[27].mxu0  ;;  %v874_v41 = vpop.f32.mrb[27].mxu1 }
 0x1a8   : > { %916 = vst [vmem:[#allocation2 + $0xd8] sm:$0xff] %v778_v40  ;;  %948 = vst [vmem:[#allocation2 + $0x1d8] sm:$0xff] %v874_v41 }
 0x1aa   : > { %v782_v42 = vpop.f32.mrb[28].mxu0  ;;  %v878_v43 = vpop.f32.mrb[28].mxu1 }
 0x1ab   : > { %917 = vst [vmem:[#allocation2 + $0xe0] sm:$0xff] %v782_v42  ;;  %949 = vst [vmem:[#allocation2 + $0x1e0] sm:$0xff] %v878_v43  ;;  %v784_v44 = vpop.f32.mrb[29].mxu0  ;;  %v880_v45 = vpop.f32.mrb[29].mxu1 }
 0x1ac   : > { %918 = vst [vmem:[#allocation2 + $0xe8] sm:$0xff] %v784_v44  ;;  %950 = vst [vmem:[#allocation2 + $0x1e8] sm:$0xff] %v880_v45 }
 0x1ae   : > { %v788_v46 = vpop.f32.mrb[30].mxu0  ;;  %v884_v47 = vpop.f32.mrb[30].mxu1 }
 0x1af   : > { %919 = vst [vmem:[#allocation2 + $0xf0] sm:$0xff] %v788_v46  ;;  %951 = vst [vmem:[#allocation2 + $0x1f0] sm:$0xff] %v884_v47  ;;  %v790_v48 = vpop.f32.mrb[31].mxu0  ;;  %v886_v49 = vpop.f32.mrb[31].mxu1 }
 0x1b0   : > { %920 = vst [vmem:[#allocation2 + $0xf8] sm:$0xff] %v790_v48  ;;  %952 = vst [vmem:[#allocation2 + $0x1f8] sm:$0xff] %v886_v49 }
 0x1b1 PF: > { %v1087_v50 = vld [vmem:[%s2816_s28 + $0x8] sm:$0xff]  ;;  %v1089_v51 = vld [vmem:[%s2816_s28 + $0x18] sm:$0xff]  ;;  %v1086_v52 = vld [vmem:[%s2816_s28] sm:$0xff]  ;;  %s3401_s11 = sld [smem:[#allocation6_spill]] }
 0x1b2   : > { %v2099_v53 = vpack.c.bf16 %v1089_v51, %v1087_v50  ;;  %v1088_v54 = vld [vmem:[%s2816_s28 + $0x10] sm:$0xff]  ;;  %v1091_v55 = vld [vmem:[%s2816_s28 + $0x28] sm:$0xff]  ;;  %v1093_v56 = vld [vmem:[%s2816_s28 + $0x38] sm:$0xff] }
 0x1b3   : > { %v2101_v57 = vpack.c.bf16 %v1088_v54, %v1086_v52  ;;  %v2103_v39 = vpack.c.bf16 %v1093_v56, %v1091_v55  ;;  %v1090_v58 = vld [vmem:[%s2816_s28 + $0x20] sm:$0xff]  ;;  %v1092_v59 = vld [vmem:[%s2816_s28 + $0x30] sm:$0xff]  ;;  %v1095_v60 = vld [vmem:[%s2816_s28 + $0x48] sm:$0xff] }
 0x1b4   : > { %2100 = vmatprep.subr.bf16.mxu0 %v2099_v53  ;;  %2179 = vmatprep.subr.bf16.mxu1 %v2099_v53  ;;  %v1097_v61 = vld [vmem:[%s2816_s28 + $0x58] sm:$0xff]  ;;  %v2105_v62 = vpack.c.bf16 %v1092_v59, %v1090_v58  ;;  %v1094_v0 = vld [vmem:[%s2816_s28 + $0x40] sm:$0xff]  ;;  %v1096_v1 = vld [vmem:[%s2816_s28 + $0x50] sm:$0xff] }
 0x1b5   : > { %2102 = vmatpush1.bf16.msra.mxu0 %v2101_v57  ;;  %2195 = vmatpush1.bf16.msra.mxu1 %v2101_v57  ;;  %v2107_v63 = vpack.c.bf16 %v1097_v61, %v1095_v60  ;;  %v1099_v2 = vld [vmem:[%s2816_s28 + $0x68] sm:$0xff]  ;;  %v1101_v3 = vld [vmem:[%s2816_s28 + $0x78] sm:$0xff]  ;;  %v2109_v4 = vpack.c.bf16 %v1096_v1, %v1094_v0  ;;  %v1098_v6 = vld [vmem:[%s2816_s28 + $0x60] sm:$0xff] }
 0x1b6   : > { %2104 = vmatprep.subr.bf16.mxu0 %v2103_v39  ;;  %2180 = vmatprep.subr.bf16.mxu1 %v2103_v39  ;;  %v2111_v5 = vpack.c.bf16 %v1101_v3, %v1099_v2  ;;  %v1100_v7 = vld [vmem:[%s2816_s28 + $0x70] sm:$0xff]  ;;  %v1103_v8 = vld [vmem:[%s2816_s28 + $0x88] sm:$0xff]  ;;  %v1105_v9 = vld [vmem:[%s2816_s28 + $0x98] sm:$0xff] }
 0x1b7   : > { %s2055_s14 = sshll.u32 %s3401_s11, 8  ;;  %v2113_v10 = vpack.c.bf16 %v1100_v7, %v1098_v6  ;;  %v2115_v11 = vpack.c.bf16 %v1105_v9, %v1103_v8  ;;  %v1102_v12 = vld [vmem:[%s2816_s28 + $0x80] sm:$0xff]  ;;  %v1104_v13 = vld [vmem:[%s2816_s28 + $0x90] sm:$0xff]  ;;  %v1107_v14 = vld [vmem:[%s2816_s28 + $0xa8] sm:$0xff]  ;;  %p2057_p7 = scmp.ne.s32.totalorder %s3401_s11, 1 }
 0x1b8   : > { %s954_s7 = sshra.s32 %s2055_s14, 7  ;;  %v1109_v15 = vld [vmem:[%s2816_s28 + $0xb8] sm:$0xff]  ;;  %v2117_v16 = vpack.c.bf16 %v1104_v13, %v1102_v12  ;;  %v1106_v18 = vld [vmem:[%s2816_s28 + $0xa0] sm:$0xff]  ;;  %v1108_v19 = vld [vmem:[%s2816_s28 + $0xb0] sm:$0xff] }
 0x1b9   : > { %2106 = vmatpush1.bf16.msra.mxu0 %v2105_v62  ;;  %2196 = vmatpush1.bf16.msra.mxu1 %v2105_v62  ;;  %s2056_s12 = sshll.u32 %s954_s7, 3  ;;  %v2119_v17 = vpack.c.bf16 %v1109_v15, %v1107_v14  ;;  %v1111_v20 = vld [vmem:[%s2816_s28 + $0xc8] sm:$0xff]  ;;  %v1113_v21 = vld [vmem:[%s2816_s28 + $0xd8] sm:$0xff]  ;;  %v2121_v22 = vpack.c.bf16 %v1108_v19, %v1106_v18  ;;  %v1110_v23 = vld [vmem:[%s2816_s28 + $0xc0] sm:$0xff] }
 0x1ba   : > { %2108 = vmatprep.subr.bf16.mxu0 %v2107_v63  ;;  %2181 = vmatprep.subr.bf16.mxu1 %v2107_v63  ;;  %s2947_s13 = scalar_lea.vmem %s2802_s4, %s2056_s12  ;;  %v2123_v24 = vpack.c.bf16 %v1113_v21, %v1111_v20  ;;  %v1112_v25 = vld [vmem:[%s2816_s28 + $0xd0] sm:$0xff]  ;;  %v1115_v28 = vld [vmem:[%s2816_s28 + $0xe8] sm:$0xff]  ;;  %v1117_v29 = vld [vmem:[%s2816_s28 + $0xf8] sm:$0xff] }
 0x1bb   : > { %v959_v26 = vld [vmem:[%s2947_s13 + $0x8] sm:$0xff]  ;;  %v2125_v30 = vpack.c.bf16 %v1112_v25, %v1110_v23  ;;  %v2127_v31 = vpack.c.bf16 %v1117_v29, %v1115_v28  ;;  %v1114_v32 = vld [vmem:[%s2816_s28 + $0xe0] sm:$0xff]  ;;  %v1116_v33 = vld [vmem:[%s2816_s28 + $0xf0] sm:$0xff] }
 0x1bc   : > { %v991_v27 = vld [vmem:[%s2947_s13 + $0x208] sm:$0xff]  ;;  %1214 = vmatprep.mubr.f32.mxu0 %v959_v26  ;;  %v1121_v35 = vld [vmem:[%s2816_s28 + $0x118] sm:$0xff]  ;;  %v2129_v36 = vpack.c.bf16 %v1116_v33, %v1114_v32  ;;  %v1118_v38 = vld [vmem:[%s2816_s28 + $0x100] sm:$0xff] }
 0x1bd   : > { %2110 = vmatpush1.bf16.msra.mxu0 %v2109_v4  ;;  %2197 = vmatpush1.bf16.msra.mxu1 %v2109_v4  ;;  %v1119_v34 = vld [vmem:[%s2816_s28 + $0x108] sm:$0xff]  ;;  %v1120_v40 = vld [vmem:[%s2816_s28 + $0x110] sm:$0xff]  ;;  %v1125_v42 = vld [vmem:[%s2816_s28 + $0x138] sm:$0xff] }
 0x1be   : > { %2112 = vmatprep.subr.bf16.mxu0 %v2111_v5  ;;  %2182 = vmatprep.subr.bf16.mxu1 %v2111_v5  ;;  %v2131_v37 = vpack.c.bf16 %v1121_v35, %v1119_v34  ;;  %v1123_v41 = vld [vmem:[%s2816_s28 + $0x128] sm:$0xff]  ;;  %v2133_v43 = vpack.c.bf16 %v1120_v40, %v1118_v38  ;;  %v1122_v45 = vld [vmem:[%s2816_s28 + $0x120] sm:$0xff]  ;;  %v1124_v46 = vld [vmem:[%s2816_s28 + $0x130] sm:$0xff] }
 0x1bf   : > { %1310 = vmatprep.mubr.f32.mxu1 %v991_v27  ;;  %v2135_v44 = vpack.c.bf16 %v1125_v42, %v1123_v41  ;;  %v1127_v47 = vld [vmem:[%s2816_s28 + $0x148] sm:$0xff]  ;;  %v1129_v48 = vld [vmem:[%s2816_s28 + $0x158] sm:$0xff]  ;;  %v2137_v49 = vpack.c.bf16 %v1124_v46, %v1122_v45  ;;  %v1126_v51 = vld [vmem:[%s2816_s28 + $0x140] sm:$0xff] }
 0x1c0   : > { %v2139_v50 = vpack.c.bf16 %v1129_v48, %v1127_v47  ;;  %v1128_v52 = vld [vmem:[%s2816_s28 + $0x150] sm:$0xff]  ;;  %v1131_v53 = vld [vmem:[%s2816_s28 + $0x168] sm:$0xff]  ;;  %v1133_v54 = vld [vmem:[%s2816_s28 + $0x178] sm:$0xff] }
 0x1c1   : > { %2114 = vmatpush1.bf16.msra.mxu0 %v2113_v10  ;;  %2198 = vmatpush1.bf16.msra.mxu1 %v2113_v10  ;;  %v2141_v55 = vpack.c.bf16 %v1128_v52, %v1126_v51  ;;  %v2143_v56 = vpack.c.bf16 %v1133_v54, %v1131_v53  ;;  %v1130_v57 = vld [vmem:[%s2816_s28 + $0x160] sm:$0xff]  ;;  %v1132_v39 = vld [vmem:[%s2816_s28 + $0x170] sm:$0xff]  ;;  %v1135_v58 = vld [vmem:[%s2816_s28 + $0x188] sm:$0xff] }
 0x1c2   : > { %2116 = vmatprep.subr.bf16.mxu0 %v2115_v11  ;;  %2183 = vmatprep.subr.bf16.mxu1 %v2115_v11  ;;  %v1137_v59 = vld [vmem:[%s2816_s28 + $0x198] sm:$0xff]  ;;  %v2145_v60 = vpack.c.bf16 %v1132_v39, %v1130_v57  ;;  %v1134_v62 = vld [vmem:[%s2816_s28 + $0x180] sm:$0xff]  ;;  %v1136_v63 = vld [vmem:[%s2816_s28 + $0x190] sm:$0xff] }
 0x1c3   : > { %v2147_v61 = vpack.c.bf16 %v1137_v59, %v1135_v58  ;;  %v1139_v0 = vld [vmem:[%s2816_s28 + $0x1a8] sm:$0xff]  ;;  %v1141_v1 = vld [vmem:[%s2816_s28 + $0x1b8] sm:$0xff]  ;;  %v2149_v2 = vpack.c.bf16 %v1136_v63, %v1134_v62  ;;  %v1138_v4 = vld [vmem:[%s2816_s28 + $0x1a0] sm:$0xff] }
 0x1c4   : > { %v2151_v3 = vpack.c.bf16 %v1141_v1, %v1139_v0  ;;  %v1140_v5 = vld [vmem:[%s2816_s28 + $0x1b0] sm:$0xff]  ;;  %v1143_v6 = vld [vmem:[%s2816_s28 + $0x1c8] sm:$0xff]  ;;  %v1145_v7 = vld [vmem:[%s2816_s28 + $0x1d8] sm:$0xff] }
 0x1c5   : > { %2118 = vmatpush1.bf16.msra.mxu0 %v2117_v16  ;;  %2199 = vmatpush1.bf16.msra.mxu1 %v2117_v16  ;;  %v2153_v8 = vpack.c.bf16 %v1140_v5, %v1138_v4  ;;  %v2155_v9 = vpack.c.bf16 %v1145_v7, %v1143_v6  ;;  %v1142_v10 = vld [vmem:[%s2816_s28 + $0x1c0] sm:$0xff]  ;;  %v1144_v11 = vld [vmem:[%s2816_s28 + $0x1d0] sm:$0xff]  ;;  %v1147_v12 = vld [vmem:[%s2816_s28 + $0x1e8] sm:$0xff] }
 0x1c6   : > { %2120 = vmatprep.subr.bf16.mxu0 %v2119_v17  ;;  %2184 = vmatprep.subr.bf16.mxu1 %v2119_v17  ;;  %v1149_v13 = vld [vmem:[%s2816_s28 + $0x1f8] sm:$0xff]  ;;  %v2157_v14 = vpack.c.bf16 %v1144_v11, %v1142_v10  ;;  %v1146_v16 = vld [vmem:[%s2816_s28 + $0x1e0] sm:$0xff]  ;;  %v1148_v17 = vld [vmem:[%s2816_s28 + $0x1f0] sm:$0xff] }
 0x1c7   : > { %v2159_v15 = vpack.c.bf16 %v1149_v13, %v1147_v12  ;;  %v2161_v18 = vpack.c.bf16 %v1148_v17, %v1146_v16  ;;  %v958_v19 = vld [vmem:[%s2947_s13] sm:$0xff]  ;;  %v961_v21 = vld [vmem:[%s2947_s13 + $0x28] sm:$0xff] }
 0x1c8   : > { %v990_v20 = vld [vmem:[%s2947_s13 + $0x200] sm:$0xff]  ;;  %v963_v25 = vld [vmem:[%s2947_s13 + $0x48] sm:$0xff] }
 0x1c9   : > { %2122 = vmatpush1.bf16.msra.mxu0 %v2121_v22  ;;  %2200 = vmatpush1.bf16.msra.mxu1 %v2121_v22  ;;  %v993_v22 = vld [vmem:[%s2947_s13 + $0x228] sm:$0xff]  ;;  %v960_v23 = vld [vmem:[%s2947_s13 + $0x20] sm:$0xff] }
 0x1ca   : > { %2124 = vmatprep.subr.bf16.mxu0 %v2123_v24  ;;  %2185 = vmatprep.subr.bf16.mxu1 %v2123_v24  ;;  %v992_v24 = vld [vmem:[%s2947_s13 + $0x220] sm:$0xff]  ;;  %v995_v26 = vld [vmem:[%s2947_s13 + $0x248] sm:$0xff] }
 0x1cb   : > { %v962_v27 = vld [vmem:[%s2947_s13 + $0x40] sm:$0xff]  ;;  %v965_v29 = vld [vmem:[%s2947_s13 + $0x68] sm:$0xff] }
 0x1cc   : > { %v994_v28 = vld [vmem:[%s2947_s13 + $0x240] sm:$0xff]  ;;  %v967_v33 = vld [vmem:[%s2947_s13 + $0x88] sm:$0xff] }
 0x1cd   : > { %2126 = vmatpush1.bf16.msra.mxu0 %v2125_v30  ;;  %2201 = vmatpush1.bf16.msra.mxu1 %v2125_v30  ;;  %v997_v30 = vld [vmem:[%s2947_s13 + $0x268] sm:$0xff]  ;;  %v996_v32 = vld [vmem:[%s2947_s13 + $0x260] sm:$0xff] }
 0x1ce   : > { %2128 = vmatprep.subr.bf16.mxu0 %v2127_v31  ;;  %2186 = vmatprep.subr.bf16.mxu1 %v2127_v31  ;;  %v964_v31 = vld [vmem:[%s2947_s13 + $0x60] sm:$0xff]  ;;  %v999_v34 = vld [vmem:[%s2947_s13 + $0x288] sm:$0xff] }
 0x1cf   : > { %v966_v35 = vld [vmem:[%s2947_s13 + $0x80] sm:$0xff]  ;;  %v1001_v38 = vld [vmem:[%s2947_s13 + $0x2a8] sm:$0xff] }
 0x1d0   : > { %v968_v40 = vld [vmem:[%s2947_s13 + $0xa0] sm:$0xff]  ;;  %v971_v42 = vld [vmem:[%s2947_s13 + $0xc8] sm:$0xff] }
 0x1d1   : > { %2130 = vmatpush1.bf16.msra.mxu0 %v2129_v36  ;;  %2202 = vmatpush1.bf16.msra.mxu1 %v2129_v36  ;;  %v998_v36 = vld [vmem:[%s2947_s13 + $0x280] sm:$0xff]  ;;  %v973_v46 = vld [vmem:[%s2947_s13 + $0xe8] sm:$0xff] }
 0x1d2   : > { %2132 = vmatprep.subr.bf16.mxu0 %v2131_v37  ;;  %2187 = vmatprep.subr.bf16.mxu1 %v2131_v37  ;;  %v969_v37 = vld [vmem:[%s2947_s13 + $0xa8] sm:$0xff]  ;;  %v1000_v41 = vld [vmem:[%s2947_s13 + $0x2a0] sm:$0xff] }
 0x1d3   : > { %v1002_v45 = vld [vmem:[%s2947_s13 + $0x2c0] sm:$0xff]  ;;  %v1005_v47 = vld [vmem:[%s2947_s13 + $0x2e8] sm:$0xff] }
 0x1d4   : > { %v972_v48 = vld [vmem:[%s2947_s13 + $0xe0] sm:$0xff]  ;;  %v1007_v51 = vld [vmem:[%s2947_s13 + $0x308] sm:$0xff] }
 0x1d5   : > { %2134 = vmatpush1.bf16.msra.mxu0 %v2133_v43  ;;  %2203 = vmatpush1.bf16.msra.mxu1 %v2133_v43  ;;  %v1003_v43 = vld [vmem:[%s2947_s13 + $0x2c8] sm:$0xff]  ;;  %v974_v52 = vld [vmem:[%s2947_s13 + $0x100] sm:$0xff] }
 0x1d6   : > { %2136 = vmatprep.subr.bf16.mxu0 %v2135_v44  ;;  %2188 = vmatprep.subr.bf16.mxu1 %v2135_v44  ;;  %v970_v44 = vld [vmem:[%s2947_s13 + $0xc0] sm:$0xff]  ;;  %v977_v54 = vld [vmem:[%s2947_s13 + $0x128] sm:$0xff] }
 0x1d7   : > { %v1006_v53 = vld [vmem:[%s2947_s13 + $0x300] sm:$0xff]  ;;  %v979_v39 = vld [vmem:[%s2947_s13 + $0x148] sm:$0xff] }
 0x1d8   : > { %v1008_v57 = vld [vmem:[%s2947_s13 + $0x320] sm:$0xff]  ;;  %v1011_v58 = vld [vmem:[%s2947_s13 + $0x348] sm:$0xff] }
 0x1d9   : > { %2138 = vmatpush1.bf16.msra.mxu0 %v2137_v49  ;;  %2204 = vmatpush1.bf16.msra.mxu1 %v2137_v49  ;;  %v1004_v49 = vld [vmem:[%s2947_s13 + $0x2e0] sm:$0xff]  ;;  %v1013_v62 = vld [vmem:[%s2947_s13 + $0x368] sm:$0xff] }
 0x1da   : > { %2140 = vmatprep.subr.bf16.mxu0 %v2139_v50  ;;  %2189 = vmatprep.subr.bf16.mxu1 %v2139_v50  ;;  %v975_v50 = vld [vmem:[%s2947_s13 + $0x108] sm:$0xff]  ;;  %v978_v59 = vld [vmem:[%s2947_s13 + $0x140] sm:$0xff] }
 0x1db   : > { %v980_v63 = vld [vmem:[%s2947_s13 + $0x160] sm:$0xff]  ;;  %v983_v1 = vld [vmem:[%s2947_s13 + $0x188] sm:$0xff] }
 0x1dc   : > { %v1012_v0 = vld [vmem:[%s2947_s13 + $0x360] sm:$0xff]  ;;  %v985_v5 = vld [vmem:[%s2947_s13 + $0x1a8] sm:$0xff] }
 0x1dd   : > { %2142 = vmatpush1.bf16.msra.mxu0 %v2141_v55  ;;  %2205 = vmatpush1.bf16.msra.mxu1 %v2141_v55  ;;  %v1009_v55 = vld [vmem:[%s2947_s13 + $0x328] sm:$0xff]  ;;  %v1014_v4 = vld [vmem:[%s2947_s13 + $0x380] sm:$0xff] }
 0x1de   : > { %2144 = vmatprep.subr.bf16.mxu0 %v2143_v56  ;;  %2190 = vmatprep.subr.bf16.mxu1 %v2143_v56  ;;  %v976_v56 = vld [vmem:[%s2947_s13 + $0x120] sm:$0xff]  ;;  %v1017_v6 = vld [vmem:[%s2947_s13 + $0x3a8] sm:$0xff] }
 0x1df   : > { %v984_v7 = vld [vmem:[%s2947_s13 + $0x1a0] sm:$0xff]  ;;  %v1019_v10 = vld [vmem:[%s2947_s13 + $0x3c8] sm:$0xff] }
 0x1e0   : > { %v986_v11 = vld [vmem:[%s2947_s13 + $0x1c0] sm:$0xff]  ;;  %v989_v13 = vld [vmem:[%s2947_s13 + $0x1e8] sm:$0xff] }
 0x1e1   : > { %2146 = vmatpush1.bf16.msra.mxu0 %v2145_v60  ;;  %2206 = vmatpush1.bf16.msra.mxu1 %v2145_v60  ;;  %v1010_v60 = vld [vmem:[%s2947_s13 + $0x340] sm:$0xff] }
 0x1e2   : > { %2148 = vmatprep.subr.bf16.mxu0 %v2147_v61  ;;  %2191 = vmatprep.subr.bf16.mxu1 %v2147_v61  ;;  %v981_v61 = vld [vmem:[%s2947_s13 + $0x168] sm:$0xff]  ;;  %v1018_v12 = vld [vmem:[%s2947_s13 + $0x3c0] sm:$0xff] }
 0x1e3   : > { %v1020_v16 = vld [vmem:[%s2947_s13 + $0x3e0] sm:$0xff] }
 0x1e4   : > { %v1022_v17 = vld [vmem:[#allocation2] sm:$0xff] }
 0x1e5   : > { %2150 = vmatpush1.bf16.msra.mxu0 %v2149_v2  ;;  %2207 = vmatpush1.bf16.msra.mxu1 %v2149_v2  ;;  %v1015_v2 = vld [vmem:[%s2947_s13 + $0x388] sm:$0xff] }
 0x1e6   : > { %2152 = vmatprep.subr.bf16.mxu0 %v2151_v3  ;;  %2192 = vmatprep.subr.bf16.mxu1 %v2151_v3  ;;  %v982_v3 = vld [vmem:[%s2947_s13 + $0x180] sm:$0xff] }
 0x1e9   : > { %2154 = vmatpush1.bf16.msra.mxu0 %v2153_v8  ;;  %2208 = vmatpush1.bf16.msra.mxu1 %v2153_v8  ;;  %v1016_v8 = vld [vmem:[%s2947_s13 + $0x3a0] sm:$0xff] }
 0x1ea   : > { %2156 = vmatprep.subr.bf16.mxu0 %v2155_v9  ;;  %2193 = vmatprep.subr.bf16.mxu1 %v2155_v9  ;;  %v987_v9 = vld [vmem:[%s2947_s13 + $0x1c8] sm:$0xff] }
 0x1ed   : > { %2158 = vmatpush1.bf16.msra.mxu0 %v2157_v14  ;;  %2209 = vmatpush1.bf16.msra.mxu1 %v2157_v14  ;;  %v1021_v14 = vld [vmem:[%s2947_s13 + $0x3e8] sm:$0xff] }
 0x1ee   : > { %2160 = vmatprep.subr.bf16.mxu0 %v2159_v15  ;;  %2194 = vmatprep.subr.bf16.mxu1 %v2159_v15  ;;  %v988_v15 = vld [vmem:[%s2947_s13 + $0x1e0] sm:$0xff] }
 0x1f1   : > { %2162 = vmatpush1.bf16.msra.mxu0 %v2161_v18  ;;  %2210 = vmatpush1.bf16.msra.mxu1 %v2161_v18  ;;  %v1054_v18 = vld [vmem:[#allocation2 + $0x100] sm:$0xff] }
 0x1f4   : > { %1215 = vmatmul.mubr.f32.vlgmr.msra.gmra.mrb[0].mxu0 %v958_v19  ;;  %1311 = vmatmul.mubr.f32.vlgmr.msra.gmra.mrb[0].mxu1 %v990_v20  ;;  %v1023_v19 = vld [vmem:[#allocation2 + $0x8] sm:$0xff] }
 0x1f5   : > { %1220 = vmatprep.mubr.f32.mxu0 %v961_v21  ;;  %1316 = vmatprep.mubr.f32.mxu1 %v993_v22  ;;  %v1055_v20 = vld [vmem:[#allocation2 + $0x108] sm:$0xff] }
 0x1f8   : > { %1221 = vmatmul.mubr.f32.gmra.mrb[2].mxu0 %v960_v23  ;;  %1317 = vmatmul.mubr.f32.gmra.mrb[2].mxu1 %v992_v24 }
 0x1f9   : > { %1226 = vmatprep.mubr.f32.mxu0 %v963_v25  ;;  %1322 = vmatprep.mubr.f32.mxu1 %v995_v26 }
 0x1fc   : > { %1227 = vmatmul.mubr.f32.gmra.mrb[4].mxu0 %v962_v27  ;;  %1323 = vmatmul.mubr.f32.gmra.mrb[4].mxu1 %v994_v28 }
 0x1fd   : > { %1232 = vmatprep.mubr.f32.mxu0 %v965_v29  ;;  %1328 = vmatprep.mubr.f32.mxu1 %v997_v30  ;;  %v1024_v29 = vld [vmem:[#allocation2 + $0x10] sm:$0xff] }
 0x1fe   : > { %v1056_v30 = vld [vmem:[#allocation2 + $0x110] sm:$0xff] }
 0x200   : > { %1233 = vmatmul.mubr.f32.gmra.mrb[6].mxu0 %v964_v31  ;;  %1329 = vmatmul.mubr.f32.gmra.mrb[6].mxu1 %v996_v32  ;;  %v1025_v31 = vld [vmem:[#allocation2 + $0x18] sm:$0xff] }
 0x201   : > { %1238 = vmatprep.mubr.f32.mxu0 %v967_v33  ;;  %1334 = vmatprep.mubr.f32.mxu1 %v999_v34  ;;  %v1057_v32 = vld [vmem:[#allocation2 + $0x118] sm:$0xff] }
 0x204   : > { %1239 = vmatmul.mubr.f32.gmra.mrb[8].mxu0 %v966_v35  ;;  %1335 = vmatmul.mubr.f32.gmra.mrb[8].mxu1 %v998_v36 }
 0x205   : > { %1244 = vmatprep.mubr.f32.mxu0 %v969_v37  ;;  %1340 = vmatprep.mubr.f32.mxu1 %v1001_v38 }
 0x208   : > { %1245 = vmatmul.mubr.f32.gmra.mrb[10].mxu0 %v968_v40  ;;  %1341 = vmatmul.mubr.f32.gmra.mrb[10].mxu1 %v1000_v41 }
 0x209   : > { %1250 = vmatprep.mubr.f32.mxu0 %v971_v42  ;;  %1346 = vmatprep.mubr.f32.mxu1 %v1003_v43  ;;  %v1026_v42 = vld [vmem:[#allocation2 + $0x20] sm:$0xff] }
 0x20a   : > { %v1058_v43 = vld [vmem:[#allocation2 + $0x120] sm:$0xff] }
 0x20c   : > { %1251 = vmatmul.mubr.f32.gmra.mrb[12].mxu0 %v970_v44  ;;  %1347 = vmatmul.mubr.f32.gmra.mrb[12].mxu1 %v1002_v45  ;;  %v1027_v44 = vld [vmem:[#allocation2 + $0x28] sm:$0xff] }
 0x20d   : > { %1256 = vmatprep.mubr.f32.mxu0 %v973_v46  ;;  %1352 = vmatprep.mubr.f32.mxu1 %v1005_v47  ;;  %v1059_v45 = vld [vmem:[#allocation2 + $0x128] sm:$0xff] }
 0x210   : > { %1257 = vmatmul.mubr.f32.gmra.mrb[14].mxu0 %v972_v48  ;;  %1353 = vmatmul.mubr.f32.gmra.mrb[14].mxu1 %v1004_v49 }
 0x211   : > { %1262 = vmatprep.mubr.f32.mxu0 %v975_v50  ;;  %1358 = vmatprep.mubr.f32.mxu1 %v1007_v51 }
 0x214   : > { %1263 = vmatmul.mubr.f32.gmra.mrb[16].mxu0 %v974_v52  ;;  %1359 = vmatmul.mubr.f32.gmra.mrb[16].mxu1 %v1006_v53 }
 0x215   : > { %1268 = vmatprep.mubr.f32.mxu0 %v977_v54  ;;  %1364 = vmatprep.mubr.f32.mxu1 %v1009_v55  ;;  %v1028_v54 = vld [vmem:[#allocation2 + $0x30] sm:$0xff] }
 0x216   : > { %v1060_v55 = vld [vmem:[#allocation2 + $0x130] sm:$0xff] }
 0x218   : > { %1269 = vmatmul.mubr.f32.gmra.mrb[18].mxu0 %v976_v56  ;;  %1365 = vmatmul.mubr.f32.gmra.mrb[18].mxu1 %v1008_v57  ;;  %v1029_v56 = vld [vmem:[#allocation2 + $0x38] sm:$0xff] }
 0x219   : > { %1274 = vmatprep.mubr.f32.mxu0 %v979_v39  ;;  %1370 = vmatprep.mubr.f32.mxu1 %v1011_v58  ;;  %v1061_v57 = vld [vmem:[#allocation2 + $0x138] sm:$0xff] }
 0x21c   : > { %1275 = vmatmul.mubr.f32.gmra.mrb[20].mxu0 %v978_v59  ;;  %1371 = vmatmul.mubr.f32.gmra.mrb[20].mxu1 %v1010_v60 }
 0x21d   : > { %1280 = vmatprep.mubr.f32.mxu0 %v981_v61  ;;  %1376 = vmatprep.mubr.f32.mxu1 %v1013_v62 }
 0x220   : > { %1281 = vmatmul.mubr.f32.gmra.mrb[22].mxu0 %v980_v63  ;;  %1377 = vmatmul.mubr.f32.gmra.mrb[22].mxu1 %v1012_v0 }
 0x221   : > { %1286 = vmatprep.mubr.f32.mxu0 %v983_v1  ;;  %1382 = vmatprep.mubr.f32.mxu1 %v1015_v2  ;;  %v1030_v1 = vld [vmem:[#allocation2 + $0x40] sm:$0xff] }
 0x222   : > { %v1062_v2 = vld [vmem:[#allocation2 + $0x140] sm:$0xff] }
 0x224   : > { %1287 = vmatmul.mubr.f32.gmra.mrb[24].mxu0 %v982_v3  ;;  %1383 = vmatmul.mubr.f32.gmra.mrb[24].mxu1 %v1014_v4  ;;  %v1031_v3 = vld [vmem:[#allocation2 + $0x48] sm:$0xff] }
 0x225   : > { %1292 = vmatprep.mubr.f32.mxu0 %v985_v5  ;;  %1388 = vmatprep.mubr.f32.mxu1 %v1017_v6  ;;  %v1063_v4 = vld [vmem:[#allocation2 + $0x148] sm:$0xff] }
 0x228   : > { %1293 = vmatmul.mubr.f32.gmra.mrb[26].mxu0 %v984_v7  ;;  %1389 = vmatmul.mubr.f32.gmra.mrb[26].mxu1 %v1016_v8 }
 0x229   : > { %1298 = vmatprep.mubr.f32.mxu0 %v987_v9  ;;  %1394 = vmatprep.mubr.f32.mxu1 %v1019_v10 }
 0x22c   : > { %1299 = vmatmul.mubr.f32.gmra.mrb[28].mxu0 %v986_v11  ;;  %1395 = vmatmul.mubr.f32.gmra.mrb[28].mxu1 %v1018_v12 }
 0x22d   : > { %1304 = vmatprep.mubr.f32.mxu0 %v989_v13  ;;  %1400 = vmatprep.mubr.f32.mxu1 %v1021_v14  ;;  %v1032_v13 = vld [vmem:[#allocation2 + $0x50] sm:$0xff] }
 0x22e   : > { %v1064_v14 = vld [vmem:[#allocation2 + $0x150] sm:$0xff] }
 0x230   : > { %1305 = vmatmul.mubr.f32.gmra.mrb[30].mxu0 %v988_v15  ;;  %1401 = vmatmul.mubr.f32.gmra.mrb[30].mxu1 %v1020_v16  ;;  %v1033_v15 = vld [vmem:[#allocation2 + $0x58] sm:$0xff] }
 0x231   : > { %v1065_v16 = vld [vmem:[#allocation2 + $0x158] sm:$0xff] }
 0x2c7   : > { %v1216_v21 = vpop.f32.mrb[0].mxu0  ;;  %v1312_v22 = vpop.f32.mrb[0].mxu1 }
 0x2c8   : > { %v1407_v23 = vadd.f32 %v1216_v21, %v1022_v17  ;;  %v1439_v24 = vadd.f32 %v1312_v22, %v1054_v18  ;;  %v1218_v25 = vpop.f32.mrb[1].mxu0  ;;  %v1314_v26 = vpop.f32.mrb[1].mxu1 }
 0x2c9   : > { %v1408_v27 = vadd.f32 %v1218_v25, %v1023_v19  ;;  %v1440_v28 = vadd.f32 %v1314_v26, %v1055_v20  ;;  %v1034_v25 = vld [vmem:[#allocation2 + $0x60] sm:$0xff] }
 0x2ca   : > { %1471 = vst [vmem:[#allocation2] sm:$0xff] %v1407_v23  ;;  %1503 = vst [vmem:[#allocation2 + $0x100] sm:$0xff] %v1439_v24  ;;  %v1066_v26 = vld [vmem:[#allocation2 + $0x160] sm:$0xff] }
 0x2cb   : > { %1472 = vst [vmem:[#allocation2 + $0x8] sm:$0xff] %v1408_v27  ;;  %1504 = vst [vmem:[#allocation2 + $0x108] sm:$0xff] %v1440_v28  ;;  %v1222_v33 = vpop.f32.mrb[2].mxu0  ;;  %v1318_v34 = vpop.f32.mrb[2].mxu1  ;;  %v1035_v27 = vld [vmem:[#allocation2 + $0x68] sm:$0xff] }
 0x2cc   : > { %v1409_v35 = vadd.f32 %v1222_v33, %v1024_v29  ;;  %v1441_v36 = vadd.f32 %v1318_v34, %v1056_v30  ;;  %v1224_v37 = vpop.f32.mrb[3].mxu0  ;;  %v1320_v38 = vpop.f32.mrb[3].mxu1  ;;  %v1067_v28 = vld [vmem:[#allocation2 + $0x168] sm:$0xff] }
 0x2cd   : > { %v1410_v40 = vadd.f32 %v1224_v37, %v1025_v31  ;;  %v1442_v41 = vadd.f32 %v1320_v38, %v1057_v32  ;;  %v1036_v37 = vld [vmem:[#allocation2 + $0x70] sm:$0xff] }
 0x2ce   : > { %1473 = vst [vmem:[#allocation2 + $0x10] sm:$0xff] %v1409_v35  ;;  %1505 = vst [vmem:[#allocation2 + $0x110] sm:$0xff] %v1441_v36  ;;  %v1068_v38 = vld [vmem:[#allocation2 + $0x170] sm:$0xff] }
 0x2cf   : > { %1474 = vst [vmem:[#allocation2 + $0x18] sm:$0xff] %v1410_v40  ;;  %1506 = vst [vmem:[#allocation2 + $0x118] sm:$0xff] %v1442_v41  ;;  %v1228_v46 = vpop.f32.mrb[4].mxu0  ;;  %v1324_v47 = vpop.f32.mrb[4].mxu1  ;;  %v1037_v40 = vld [vmem:[#allocation2 + $0x78] sm:$0xff] }
 0x2d0   : > { %v1411_v48 = vadd.f32 %v1228_v46, %v1026_v42  ;;  %v1443_v49 = vadd.f32 %v1324_v47, %v1058_v43  ;;  %v1230_v50 = vpop.f32.mrb[5].mxu0  ;;  %v1326_v51 = vpop.f32.mrb[5].mxu1  ;;  %v1069_v41 = vld [vmem:[#allocation2 + $0x178] sm:$0xff] }
 0x2d1   : > { %v1412_v52 = vadd.f32 %v1230_v50, %v1027_v44  ;;  %v1444_v53 = vadd.f32 %v1326_v51, %v1059_v45  ;;  %v1038_v50 = vld [vmem:[#allocation2 + $0x80] sm:$0xff] }
 0x2d2   : > { %1475 = vst [vmem:[#allocation2 + $0x20] sm:$0xff] %v1411_v48  ;;  %1507 = vst [vmem:[#allocation2 + $0x120] sm:$0xff] %v1443_v49  ;;  %v1070_v51 = vld [vmem:[#allocation2 + $0x180] sm:$0xff] }
 0x2d3   : > { %1476 = vst [vmem:[#allocation2 + $0x28] sm:$0xff] %v1412_v52  ;;  %1508 = vst [vmem:[#allocation2 + $0x128] sm:$0xff] %v1444_v53  ;;  %v1234_v39 = vpop.f32.mrb[6].mxu0  ;;  %v1330_v58 = vpop.f32.mrb[6].mxu1  ;;  %v1039_v52 = vld [vmem:[#allocation2 + $0x88] sm:$0xff] }
 0x2d4   : > { %v1413_v59 = vadd.f32 %v1234_v39, %v1028_v54  ;;  %v1445_v60 = vadd.f32 %v1330_v58, %v1060_v55  ;;  %v1236_v61 = vpop.f32.mrb[7].mxu0  ;;  %v1332_v62 = vpop.f32.mrb[7].mxu1  ;;  %v1071_v53 = vld [vmem:[#allocation2 + $0x188] sm:$0xff] }
 0x2d5   : > { %v1414_v63 = vadd.f32 %v1236_v61, %v1029_v56  ;;  %v1446_v0 = vadd.f32 %v1332_v62, %v1061_v57  ;;  %v1040_v61 = vld [vmem:[#allocation2 + $0x90] sm:$0xff] }
 0x2d6   : > { %1477 = vst [vmem:[#allocation2 + $0x30] sm:$0xff] %v1413_v59  ;;  %1509 = vst [vmem:[#allocation2 + $0x130] sm:$0xff] %v1445_v60  ;;  %v1072_v62 = vld [vmem:[#allocation2 + $0x190] sm:$0xff] }
 0x2d7   : > { %1478 = vst [vmem:[#allocation2 + $0x38] sm:$0xff] %v1414_v63  ;;  %1510 = vst [vmem:[#allocation2 + $0x138] sm:$0xff] %v1446_v0  ;;  %v1240_v5 = vpop.f32.mrb[8].mxu0  ;;  %v1336_v6 = vpop.f32.mrb[8].mxu1  ;;  %v1041_v63 = vld [vmem:[#allocation2 + $0x98] sm:$0xff] }
 0x2d8   : > { %v1415_v7 = vadd.f32 %v1240_v5, %v1030_v1  ;;  %v1447_v8 = vadd.f32 %v1336_v6, %v1062_v2  ;;  %v1242_v9 = vpop.f32.mrb[9].mxu0  ;;  %v1338_v10 = vpop.f32.mrb[9].mxu1  ;;  %v1073_v0 = vld [vmem:[#allocation2 + $0x198] sm:$0xff] }
 0x2d9   : > { %v1416_v11 = vadd.f32 %v1242_v9, %v1031_v3  ;;  %v1448_v12 = vadd.f32 %v1338_v10, %v1063_v4  ;;  %v1042_v9 = vld [vmem:[#allocation2 + $0xa0] sm:$0xff] }
 0x2da   : > { %1479 = vst [vmem:[#allocation2 + $0x40] sm:$0xff] %v1415_v7  ;;  %1511 = vst [vmem:[#allocation2 + $0x140] sm:$0xff] %v1447_v8  ;;  %v1074_v10 = vld [vmem:[#allocation2 + $0x1a0] sm:$0xff] }
 0x2db   : > { %1480 = vst [vmem:[#allocation2 + $0x48] sm:$0xff] %v1416_v11  ;;  %1512 = vst [vmem:[#allocation2 + $0x148] sm:$0xff] %v1448_v12  ;;  %v1246_v17 = vpop.f32.mrb[10].mxu0  ;;  %v1342_v18 = vpop.f32.mrb[10].mxu1  ;;  %v1043_v11 = vld [vmem:[#allocation2 + $0xa8] sm:$0xff] }
 0x2dc   : > { %v1417_v19 = vadd.f32 %v1246_v17, %v1032_v13  ;;  %v1449_v20 = vadd.f32 %v1342_v18, %v1064_v14  ;;  %v1248_v21 = vpop.f32.mrb[11].mxu0  ;;  %v1344_v22 = vpop.f32.mrb[11].mxu1  ;;  %v1075_v12 = vld [vmem:[#allocation2 + $0x1a8] sm:$0xff] }
 0x2dd   : > { %v1418_v23 = vadd.f32 %v1248_v21, %v1033_v15  ;;  %v1450_v24 = vadd.f32 %v1344_v22, %v1065_v16  ;;  %v1044_v21 = vld [vmem:[#allocation2 + $0xb0] sm:$0xff] }
 0x2de   : > { %1481 = vst [vmem:[#allocation2 + $0x50] sm:$0xff] %v1417_v19  ;;  %1513 = vst [vmem:[#allocation2 + $0x150] sm:$0xff] %v1449_v20  ;;  %v1076_v22 = vld [vmem:[#allocation2 + $0x1b0] sm:$0xff] }
 0x2df   : > { %1482 = vst [vmem:[#allocation2 + $0x58] sm:$0xff] %v1418_v23  ;;  %1514 = vst [vmem:[#allocation2 + $0x158] sm:$0xff] %v1450_v24  ;;  %v1252_v29 = vpop.f32.mrb[12].mxu0  ;;  %v1348_v30 = vpop.f32.mrb[12].mxu1  ;;  %v1045_v23 = vld [vmem:[#allocation2 + $0xb8] sm:$0xff] }
 0x2e0   : > { %v1419_v31 = vadd.f32 %v1252_v29, %v1034_v25  ;;  %v1451_v32 = vadd.f32 %v1348_v30, %v1066_v26  ;;  %v1254_v33 = vpop.f32.mrb[13].mxu0  ;;  %v1350_v34 = vpop.f32.mrb[13].mxu1  ;;  %v1077_v24 = vld [vmem:[#allocation2 + $0x1b8] sm:$0xff] }
 0x2e1   : > { %v1420_v35 = vadd.f32 %v1254_v33, %v1035_v27  ;;  %v1452_v36 = vadd.f32 %v1350_v34, %v1067_v28  ;;  %v1046_v33 = vld [vmem:[#allocation2 + $0xc0] sm:$0xff] }
 0x2e2   : > { %1483 = vst [vmem:[#allocation2 + $0x60] sm:$0xff] %v1419_v31  ;;  %1515 = vst [vmem:[#allocation2 + $0x160] sm:$0xff] %v1451_v32  ;;  %v1078_v34 = vld [vmem:[#allocation2 + $0x1c0] sm:$0xff] }
 0x2e3   : > { %1484 = vst [vmem:[#allocation2 + $0x68] sm:$0xff] %v1420_v35  ;;  %1516 = vst [vmem:[#allocation2 + $0x168] sm:$0xff] %v1452_v36  ;;  %v1258_v42 = vpop.f32.mrb[14].mxu0  ;;  %v1354_v43 = vpop.f32.mrb[14].mxu1  ;;  %v1047_v35 = vld [vmem:[#allocation2 + $0xc8] sm:$0xff] }
 0x2e4   : > { %v1421_v44 = vadd.f32 %v1258_v42, %v1036_v37  ;;  %v1453_v45 = vadd.f32 %v1354_v43, %v1068_v38  ;;  %v1260_v46 = vpop.f32.mrb[15].mxu0  ;;  %v1356_v47 = vpop.f32.mrb[15].mxu1  ;;  %v1079_v36 = vld [vmem:[#allocation2 + $0x1c8] sm:$0xff] }
 0x2e5   : > { %v1422_v48 = vadd.f32 %v1260_v46, %v1037_v40  ;;  %v1454_v49 = vadd.f32 %v1356_v47, %v1069_v41  ;;  %v1048_v46 = vld [vmem:[#allocation2 + $0xd0] sm:$0xff] }
 0x2e6   : > { %1485 = vst [vmem:[#allocation2 + $0x70] sm:$0xff] %v1421_v44  ;;  %1517 = vst [vmem:[#allocation2 + $0x170] sm:$0xff] %v1453_v45  ;;  %v1080_v47 = vld [vmem:[#allocation2 + $0x1d0] sm:$0xff] }
 0x2e7   : > { %1486 = vst [vmem:[#allocation2 + $0x78] sm:$0xff] %v1422_v48  ;;  %1518 = vst [vmem:[#allocation2 + $0x178] sm:$0xff] %v1454_v49  ;;  %v1264_v54 = vpop.f32.mrb[16].mxu0  ;;  %v1360_v55 = vpop.f32.mrb[16].mxu1  ;;  %v1049_v48 = vld [vmem:[#allocation2 + $0xd8] sm:$0xff] }
 0x2e8   : > { %v1423_v56 = vadd.f32 %v1264_v54, %v1038_v50  ;;  %v1455_v57 = vadd.f32 %v1360_v55, %v1070_v51  ;;  %v1266_v39 = vpop.f32.mrb[17].mxu0  ;;  %v1362_v58 = vpop.f32.mrb[17].mxu1  ;;  %v1081_v49 = vld [vmem:[#allocation2 + $0x1d8] sm:$0xff] }
 0x2e9   : > { %v1424_v59 = vadd.f32 %v1266_v39, %v1039_v52  ;;  %v1456_v60 = vadd.f32 %v1362_v58, %v1071_v53  ;;  %v1050_v39 = vld [vmem:[#allocation2 + $0xe0] sm:$0xff] }
 0x2ea   : > { %1487 = vst [vmem:[#allocation2 + $0x80] sm:$0xff] %v1423_v56  ;;  %1519 = vst [vmem:[#allocation2 + $0x180] sm:$0xff] %v1455_v57  ;;  %v1082_v58 = vld [vmem:[#allocation2 + $0x1e0] sm:$0xff] }
 0x2eb   : > { %1488 = vst [vmem:[#allocation2 + $0x88] sm:$0xff] %v1424_v59  ;;  %1520 = vst [vmem:[#allocation2 + $0x188] sm:$0xff] %v1456_v60  ;;  %v1270_v1 = vpop.f32.mrb[18].mxu0  ;;  %v1366_v2 = vpop.f32.mrb[18].mxu1  ;;  %v1051_v59 = vld [vmem:[#allocation2 + $0xe8] sm:$0xff] }
 0x2ec   : > { %v1425_v3 = vadd.f32 %v1270_v1, %v1040_v61  ;;  %v1457_v4 = vadd.f32 %v1366_v2, %v1072_v62  ;;  %v1272_v5 = vpop.f32.mrb[19].mxu0  ;;  %v1368_v6 = vpop.f32.mrb[19].mxu1  ;;  %v1083_v60 = vld [vmem:[#allocation2 + $0x1e8] sm:$0xff] }
 0x2ed   : > { %v1426_v7 = vadd.f32 %v1272_v5, %v1041_v63  ;;  %v1458_v8 = vadd.f32 %v1368_v6, %v1073_v0  ;;  %v1052_v5 = vld [vmem:[#allocation2 + $0xf0] sm:$0xff] }
 0x2ee   : > { %1489 = vst [vmem:[#allocation2 + $0x90] sm:$0xff] %v1425_v3  ;;  %1521 = vst [vmem:[#allocation2 + $0x190] sm:$0xff] %v1457_v4  ;;  %v1084_v6 = vld [vmem:[#allocation2 + $0x1f0] sm:$0xff] }
 0x2ef   : > { %1490 = vst [vmem:[#allocation2 + $0x98] sm:$0xff] %v1426_v7  ;;  %1522 = vst [vmem:[#allocation2 + $0x198] sm:$0xff] %v1458_v8  ;;  %v1276_v13 = vpop.f32.mrb[20].mxu0  ;;  %v1372_v14 = vpop.f32.mrb[20].mxu1  ;;  %v1053_v7 = vld [vmem:[#allocation2 + $0xf8] sm:$0xff] }
 0x2f0   : > { %v1427_v15 = vadd.f32 %v1276_v13, %v1042_v9  ;;  %v1459_v16 = vadd.f32 %v1372_v14, %v1074_v10  ;;  %v1278_v17 = vpop.f32.mrb[21].mxu0  ;;  %v1374_v18 = vpop.f32.mrb[21].mxu1  ;;  %v1085_v8 = vld [vmem:[#allocation2 + $0x1f8] sm:$0xff] }
 0x2f1   : > { %v1428_v19 = vadd.f32 %v1278_v17, %v1043_v11  ;;  %v1460_v20 = vadd.f32 %v1374_v18, %v1075_v12  ;;  %v1605_v17 = vlaneseq (!%p2057_p7)  ;;  %v1603_v18 = vld [vmem:[%s553_s9] sm:$0x3] (!%p2057_p7) }
 0x2f2   : > { %1491 = vst [vmem:[#allocation2 + $0xa0] sm:$0xff] %v1427_v15  ;;  %1523 = vst [vmem:[#allocation2 + $0x1a0] sm:$0xff] %v1459_v16 }
 0x2f3   : > { %1492 = vst [vmem:[#allocation2 + $0xa8] sm:$0xff] %v1428_v19  ;;  %1524 = vst [vmem:[#allocation2 + $0x1a8] sm:$0xff] %v1460_v20  ;;  %v1282_v25 = vpop.f32.mrb[22].mxu0  ;;  %v1378_v26 = vpop.f32.mrb[22].mxu1  ;;  %v1606_v19 = vshrl.u32 (!%p2057_p7), %v1605_v17, 7  ;;  %v1539_v20 = vld [vmem:[#allocation2] sm:$0xff] (!%p2057_p7) }
 0x2f4   : > { %v1429_v27 = vadd.f32 %v1282_v25, %v1044_v21  ;;  %v1461_v28 = vadd.f32 %v1378_v26, %v1076_v22  ;;  %v1284_v29 = vpop.f32.mrb[23].mxu0  ;;  %v1380_v30 = vpop.f32.mrb[23].mxu1  ;;  %v1540_v21 = vld [vmem:[#allocation2 + $0x8] sm:$0xff] (!%p2057_p7)  ;;  %v1541_v22 = vld [vmem:[#allocation2 + $0x10] sm:$0xff] (!%p2057_p7)  ;;  %v1543_v26 = vld [vmem:[#allocation2 + $0x20] sm:$0xff] (!%p2057_p7) }
 0x2f5   : > { %v1430_v31 = vadd.f32 %v1284_v29, %v1045_v23  ;;  %v1462_v32 = vadd.f32 %v1380_v30, %v1077_v24  ;;  %v1542_v23 = vld [vmem:[#allocation2 + $0x18] sm:$0xff] (!%p2057_p7)  ;;  %v1607_v24 = vsub.s32 (!%p2057_p7), 0, %v1606_v19  ;;  %v1611_v25 = vsub.s32 (!%p2057_p7), 1, %v1606_v19  ;;  %v1547_v30 = vld [vmem:[#allocation2 + $0x40] sm:$0xff] (!%p2057_p7)  ;;  %v1576_v17 = vld [vmem:[#allocation2 + $0x128] sm:$0xff] (!%p2057_p7) }
 0x2f6   : > { %1493 = vst [vmem:[#allocation2 + $0xb0] sm:$0xff] %v1429_v27  ;;  %1525 = vst [vmem:[#allocation2 + $0x1b0] sm:$0xff] %v1461_v28  ;;  %v1544_v27 = vld [vmem:[#allocation2 + $0x28] sm:$0xff] (!%p2057_p7)  ;;  %v1545_v28 = vld [vmem:[#allocation2 + $0x30] sm:$0xff] (!%p2057_p7) }
 0x2f7   : > { %1494 = vst [vmem:[#allocation2 + $0xb8] sm:$0xff] %v1430_v31  ;;  %1526 = vst [vmem:[#allocation2 + $0x1b8] sm:$0xff] %v1462_v32  ;;  %v1288_v37 = vpop.f32.mrb[24].mxu0  ;;  %v1384_v38 = vpop.f32.mrb[24].mxu1  ;;  %v1546_v29 = vld [vmem:[#allocation2 + $0x38] sm:$0xff] (!%p2057_p7)  ;;  %v1548_v31 = vld [vmem:[#allocation2 + $0x48] sm:$0xff] (!%p2057_p7) }
 0x2f8   : > { %v1431_v40 = vadd.f32 %v1288_v37, %v1046_v33  ;;  %v1463_v41 = vadd.f32 %v1384_v38, %v1078_v34  ;;  %v1290_v42 = vpop.f32.mrb[25].mxu0  ;;  %v1386_v43 = vpop.f32.mrb[25].mxu1  ;;  %v1549_v32 = vld [vmem:[#allocation2 + $0x50] sm:$0xff] (!%p2057_p7)  ;;  %v1550_v33 = vld [vmem:[#allocation2 + $0x58] sm:$0xff] (!%p2057_p7)  ;;  %v3057_v34 = vrot.slane (!%p2057_p7), %v1603_v18, %v1607_v24  ;;  %v1552_v37 = vld [vmem:[#allocation2 + $0x68] sm:$0xff] (!%p2057_p7) }
 0x2f9   : > { %v1432_v44 = vadd.f32 %v1290_v42, %v1047_v35  ;;  %v1464_v45 = vadd.f32 %v1386_v43, %v1079_v36  ;;  %v3059_v35 = vrot.slane (!%p2057_p7), %v1603_v18, %v1611_v25  ;;  %v1551_v36 = vld [vmem:[#allocation2 + $0x60] sm:$0xff] (!%p2057_p7)  ;;  %v1553_v38 = vld [vmem:[#allocation2 + $0x70] sm:$0xff] (!%p2057_p7)  ;;  %v1556_v42 = vld [vmem:[#allocation2 + $0x88] sm:$0xff] (!%p2057_p7) }
 0x2fa   : > { %1495 = vst [vmem:[#allocation2 + $0xc0] sm:$0xff] %v1431_v40  ;;  %1527 = vst [vmem:[#allocation2 + $0x1c0] sm:$0xff] %v1463_v41  ;;  %v1554_v40 = vld [vmem:[#allocation2 + $0x78] sm:$0xff] (!%p2057_p7)  ;;  %v1555_v41 = vld [vmem:[#allocation2 + $0x80] sm:$0xff] (!%p2057_p7) }
 0x2fb   : > { %1496 = vst [vmem:[#allocation2 + $0xc8] sm:$0xff] %v1432_v44  ;;  %1528 = vst [vmem:[#allocation2 + $0x1c8] sm:$0xff] %v1464_v45  ;;  %v1294_v50 = vpop.f32.mrb[26].mxu0  ;;  %v1390_v51 = vpop.f32.mrb[26].mxu1  ;;  %v1557_v43 = vld [vmem:[#allocation2 + $0x90] sm:$0xff] (!%p2057_p7)  ;;  %v1558_v44 = vld [vmem:[#allocation2 + $0x98] sm:$0xff] (!%p2057_p7)  ;;  %v1615_v45 = vadd.f32 (!%p2057_p7), %v3057_v34, %v1539_v20 }
 0x2fc   : > { %v1433_v52 = vadd.f32 %v1294_v50, %v1048_v46  ;;  %v1465_v53 = vadd.f32 %v1390_v51, %v1080_v47  ;;  %v1296_v54 = vpop.f32.mrb[27].mxu0  ;;  %v1392_v55 = vpop.f32.mrb[27].mxu1  ;;  %v1616_v46 = vadd.f32 (!%p2057_p7), %v3059_v35, %v1540_v21  ;;  %v1617_v47 = vadd.f32 (!%p2057_p7), %v3057_v34, %v1541_v22  ;;  %v1560_v50 = vld [vmem:[#allocation2 + $0xa8] sm:$0xff] (!%p2057_p7)  ;;  %v1577_v22 = vld [vmem:[#allocation2 + $0x130] sm:$0xff] (!%p2057_p7)  ;;  %v1579_v24 = vld [vmem:[#allocation2 + $0x140] sm:$0xff] (!%p2057_p7) }
 0x2fd   : > { %v1434_v56 = vadd.f32 %v1296_v54, %v1049_v48  ;;  %v1466_v57 = vadd.f32 %v1392_v55, %v1081_v49  ;;  %v1618_v48 = vadd.f32 (!%p2057_p7), %v3059_v35, %v1542_v23  ;;  %v1559_v49 = vld [vmem:[#allocation2 + $0xa0] sm:$0xff] (!%p2057_p7)  ;;  %v1561_v51 = vld [vmem:[#allocation2 + $0xb0] sm:$0xff] (!%p2057_p7)  ;;  %v1620_v54 = vadd.f32 (!%p2057_p7), %v3059_v35, %v1544_v27  ;;  %1679 = vst [vmem:[%s2820_s27] sm:$0xff] (!%p2057_p7), %v1615_v45  ;;  %v1578_v23 = vld [vmem:[#allocation2 + $0x138] sm:$0xff] (!%p2057_p7) }
 0x2fe   : > { %1497 = vst [vmem:[#allocation2 + $0xd0] sm:$0xff] %v1433_v52  ;;  %1529 = vst [vmem:[#allocation2 + $0x1d0] sm:$0xff] %v1465_v53  ;;  %v1562_v52 = vld [vmem:[#allocation2 + $0xb8] sm:$0xff] (!%p2057_p7)  ;;  %v1619_v53 = vadd.f32 (!%p2057_p7), %v3057_v34, %v1543_v26  ;;  %v1621_v55 = vadd.f32 (!%p2057_p7), %v3057_v34, %v1545_v28  ;;  %v1635_v18 = vadd.f32 (!%p2057_p7), %v3057_v34, %v1559_v49 }
 0x2ff   : > { %1498 = vst [vmem:[#allocation2 + $0xd8] sm:$0xff] %v1434_v56  ;;  %1530 = vst [vmem:[#allocation2 + $0x1d8] sm:$0xff] %v1466_v57  ;;  %v1300_v61 = vpop.f32.mrb[28].mxu0  ;;  %v1396_v62 = vpop.f32.mrb[28].mxu1  ;;  %v1622_v56 = vadd.f32 (!%p2057_p7), %v3059_v35, %v1546_v29  ;;  %v1636_v19 = vadd.f32 (!%p2057_p7), %v3059_v35, %v1560_v50  ;;  %v1637_v20 = vadd.f32 (!%p2057_p7), %v3057_v34, %v1561_v51  ;;  %v1580_v29 = vld [vmem:[#allocation2 + $0x148] sm:$0xff] (!%p2057_p7) }
 0x300   : > { %v1435_v63 = vadd.f32 %v1300_v61, %v1050_v39  ;;  %v1467_v0 = vadd.f32 %v1396_v62, %v1082_v58  ;;  %v1302_v1 = vpop.f32.mrb[29].mxu0  ;;  %v1398_v2 = vpop.f32.mrb[29].mxu1  ;;  %1680 = vst [vmem:[%s2820_s27 + $0x8] sm:$0xff] (!%p2057_p7), %v1616_v46  ;;  %1681 = vst [vmem:[%s2820_s27 + $0x10] sm:$0xff] (!%p2057_p7), %v1617_v47  ;;  %v1624_v61 = vadd.f32 (!%p2057_p7), %v3059_v35, %v1548_v31  ;;  %v1582_v31 = vld [vmem:[#allocation2 + $0x158] sm:$0xff] (!%p2057_p7)  ;;  %v1587_v47 = vld [vmem:[#allocation2 + $0x180] sm:$0xff] (!%p2057_p7) }
 0x301   : > { %v1436_v3 = vadd.f32 %v1302_v1, %v1051_v59  ;;  %v1468_v4 = vadd.f32 %v1398_v2, %v1083_v60  ;;  %1538 = sbr.rel (%p2057_p7) target bundleno = 804 (0x324), region = 94  ;;  %v1563_v57 = vld [vmem:[#allocation2 + $0xc0] sm:$0xff] (!%p2057_p7)  ;;  %1682 = vst [vmem:[%s2820_s27 + $0x18] sm:$0xff] (!%p2057_p7), %v1618_v48  ;;  %v1623_v60 = vadd.f32 (!%p2057_p7), %v3057_v34, %v1547_v30  ;;  %v1625_v62 = vadd.f32 (!%p2057_p7), %v3057_v34, %v1549_v32  ;;  %v1581_v30 = vld [vmem:[#allocation2 + $0x150] sm:$0xff] (!%p2057_p7)  ;;  %v1586_v46 = vld [vmem:[#allocation2 + $0x178] sm:$0xff] (!%p2057_p7) }
 0x302   : > { %1499 = vst [vmem:[#allocation2 + $0xe0] sm:$0xff] %v1435_v63  ;;  %1531 = vst [vmem:[#allocation2 + $0x1e0] sm:$0xff] %v1467_v0  ;;  %v1564_v39 = vld [vmem:[#allocation2 + $0xc8] sm:$0xff] (!%p2057_p7)  ;;  %v1626_v63 = vadd.f32 (!%p2057_p7), %v3059_v35, %v1550_v33  ;;  %v1638_v21 = vadd.f32 (!%p2057_p7), %v3059_v35, %v1562_v52  ;;  %v1639_v25 = vadd.f32 (!%p2057_p7), %v3057_v34, %v1563_v57 }
 0x303   : > { %1500 = vst [vmem:[#allocation2 + $0xe8] sm:$0xff] %v1436_v3  ;;  %1532 = vst [vmem:[#allocation2 + $0x1e8] sm:$0xff] %v1468_v4  ;;  %v1306_v9 = vpop.f32.mrb[30].mxu0  ;;  %v1402_v10 = vpop.f32.mrb[30].mxu1  ;;  %v1627_v4 = vadd.f32 (!%p2057_p7), %v3057_v34, %v1551_v36  ;;  %v1640_v26 = vadd.f32 (!%p2057_p7), %v3059_v35, %v1564_v39  ;;  %v1588_v48 = vld [vmem:[#allocation2 + $0x188] sm:$0xff] (!%p2057_p7)  ;;  %v1652_v50 = vadd.f32 (!%p2057_p7), %v3059_v35, %v1576_v17 }
 0x304   : > { %v1437_v11 = vadd.f32 %v1306_v9, %v1052_v5  ;;  %v1469_v12 = vadd.f32 %v1402_v10, %v1084_v6  ;;  %v1308_v13 = vpop.f32.mrb[31].mxu0  ;;  %v1404_v14 = vpop.f32.mrb[31].mxu1  ;;  %1683 = vst [vmem:[%s2820_s27 + $0x20] sm:$0xff] (!%p2057_p7), %v1619_v53  ;;  %1684 = vst [vmem:[%s2820_s27 + $0x28] sm:$0xff] (!%p2057_p7), %v1620_v54  ;;  %v1628_v5 = vadd.f32 (!%p2057_p7), %v3059_v35, %v1552_v37  ;;  %v1572_v9 = vld [vmem:[#allocation2 + $0x108] sm:$0xff] (!%p2057_p7)  ;;  %v1573_v10 = vld [vmem:[#allocation2 + $0x110] sm:$0xff] (!%p2057_p7) }
 0x305   : > { %v1438_v15 = vadd.f32 %v1308_v13, %v1053_v7  ;;  %v1470_v16 = vadd.f32 %v1404_v14, %v1085_v8  ;;  %v1565_v58 = vld [vmem:[#allocation2 + $0xd0] sm:$0xff] (!%p2057_p7)  ;;  %1685 = vst [vmem:[%s2820_s27 + $0x30] sm:$0xff] (!%p2057_p7), %v1621_v55  ;;  %1686 = vst [vmem:[%s2820_s27 + $0x38] sm:$0xff] (!%p2057_p7), %v1622_v56  ;;  %v1629_v6 = vadd.f32 (!%p2057_p7), %v3057_v34, %v1553_v38  ;;  %v1571_v8 = vld [vmem:[#allocation2 + $0x100] sm:$0xff] (!%p2057_p7) }
 0x306   : > { %1501 = vst [vmem:[#allocation2 + $0xf0] sm:$0xff] %v1437_v11  ;;  %1533 = vst [vmem:[#allocation2 + $0x1f0] sm:$0xff] %v1469_v12  ;;  %v1566_v59 = vld [vmem:[#allocation2 + $0xd8] sm:$0xff] (!%p2057_p7)  ;;  %v1630_v7 = vadd.f32 (!%p2057_p7), %v3059_v35, %v1554_v40  ;;  %v1631_v11 = vadd.f32 (!%p2057_p7), %v3057_v34, %v1555_v41  ;;  %v1632_v12 = vadd.f32 (!%p2057_p7), %v3059_v35, %v1556_v42  ;;  %v1583_v38 = vld [vmem:[#allocation2 + $0x160] sm:$0xff] (!%p2057_p7) }
 0x307   : > { %1502 = vst [vmem:[#allocation2 + $0xf8] sm:$0xff] %v1438_v15  ;;  %1534 = vst [vmem:[#allocation2 + $0x1f8] sm:$0xff] %v1470_v16  ;;  %v1633_v13 = vadd.f32 (!%p2057_p7), %v3057_v34, %v1557_v43  ;;  %v1634_v14 = vadd.f32 (!%p2057_p7), %v3059_v35, %v1558_v44  ;;  %v1574_v15 = vld [vmem:[#allocation2 + $0x118] sm:$0xff] (!%p2057_p7)  ;;  %v1575_v16 = vld [vmem:[#allocation2 + $0x120] sm:$0xff] (!%p2057_p7)  ;;  %v1641_v27 = vadd.f32 (!%p2057_p7), %v3057_v34, %v1565_v58 }
 0x308   : > { %1687 = vst [vmem:[%s2820_s27 + $0x40] sm:$0xff] %v1623_v60  ;;  %1688 = vst [vmem:[%s2820_s27 + $0x48] sm:$0xff] %v1624_v61  ;;  %v1642_v28 = vadd.f32 %v3059_v35, %v1566_v59  ;;  %v1584_v40 = vld [vmem:[#allocation2 + $0x168] sm:$0xff]  ;;  %v1585_v41 = vld [vmem:[#allocation2 + $0x170] sm:$0xff]  ;;  %v1647_v42 = vadd.f32 %v3057_v34, %v1571_v8  ;;  %v1648_v43 = vadd.f32 %v3059_v35, %v1572_v9 }
 0x309   : > { %v1567_v0 = vld [vmem:[#allocation2 + $0xe0] sm:$0xff]  ;;  %1689 = vst [vmem:[%s2820_s27 + $0x50] sm:$0xff] %v1625_v62  ;;  %1690 = vst [vmem:[%s2820_s27 + $0x58] sm:$0xff] %v1626_v63  ;;  %v1649_v44 = vadd.f32 %v3057_v34, %v1573_v10  ;;  %v1650_v45 = vadd.f32 %v3059_v35, %v1574_v15  ;;  %v1651_v49 = vadd.f32 %v3057_v34, %v1575_v16  ;;  %v1589_v53 = vld [vmem:[#allocation2 + $0x190] sm:$0xff] }
 0x30a   : > { %v1568_v1 = vld [vmem:[#allocation2 + $0xe8] sm:$0xff]  ;;  %1691 = vst [vmem:[%s2820_s27 + $0x60] sm:$0xff] %v1627_v4  ;;  %1692 = vst [vmem:[%s2820_s27 + $0x68] sm:$0xff] %v1628_v5  ;;  %v1643_v32 = vadd.f32 %v3057_v34, %v1567_v0  ;;  %v1653_v51 = vadd.f32 %v3057_v34, %v1577_v22  ;;  %v1654_v52 = vadd.f32 %v3059_v35, %v1578_v23  ;;  %v1590_v54 = vld [vmem:[#allocation2 + $0x198] sm:$0xff] }
 0x30b   : > { %1693 = vst [vmem:[%s2820_s27 + $0x70] sm:$0xff] %v1629_v6  ;;  %1694 = vst [vmem:[%s2820_s27 + $0x78] sm:$0xff] %v1630_v7  ;;  %v1644_v33 = vadd.f32 %v3059_v35, %v1568_v1  ;;  %v1591_v55 = vld [vmem:[#allocation2 + $0x1a0] sm:$0xff]  ;;  %v1655_v56 = vadd.f32 %v3057_v34, %v1579_v24  ;;  %v1656_v57 = vadd.f32 %v3059_v35, %v1580_v29  ;;  %v1592_v59 = vld [vmem:[#allocation2 + $0x1a8] sm:$0xff] }
 0x30c   : > { %1695 = vst [vmem:[%s2820_s27 + $0x80] sm:$0xff] %v1631_v11  ;;  %1696 = vst [vmem:[%s2820_s27 + $0x88] sm:$0xff] %v1632_v12  ;;  %v1657_v39 = vadd.f32 %v3057_v34, %v1581_v30  ;;  %v1658_v58 = vadd.f32 %v3059_v35, %v1582_v31  ;;  %v1593_v60 = vld [vmem:[#allocation2 + $0x1b0] sm:$0xff]  ;;  %v1594_v61 = vld [vmem:[#allocation2 + $0x1b8] sm:$0xff]  ;;  %v1659_v62 = vadd.f32 %v3057_v34, %v1583_v38 }
 0x30d   : > { %v1569_v2 = vld [vmem:[#allocation2 + $0xf0] sm:$0xff]  ;;  %1697 = vst [vmem:[%s2820_s27 + $0x90] sm:$0xff] %v1633_v13  ;;  %1698 = vst [vmem:[%s2820_s27 + $0x98] sm:$0xff] %v1634_v14  ;;  %v1660_v63 = vadd.f32 %v3059_v35, %v1584_v40  ;;  %v1661_v0 = vadd.f32 %v3057_v34, %v1585_v41  ;;  %v1662_v1 = vadd.f32 %v3059_v35, %v1586_v46  ;;  %v1598_v9 = vld [vmem:[#allocation2 + $0x1d8] sm:$0xff] }
 0x30e   : > { %v1570_v3 = vld [vmem:[#allocation2 + $0xf8] sm:$0xff]  ;;  %1699 = vst [vmem:[%s2820_s27 + $0xa0] sm:$0xff] %v1635_v18  ;;  %1700 = vst [vmem:[%s2820_s27 + $0xa8] sm:$0xff] %v1636_v19  ;;  %v1645_v36 = vadd.f32 %v3057_v34, %v1569_v2  ;;  %v1595_v2 = vld [vmem:[#allocation2 + $0x1c0] sm:$0xff]  ;;  %v1663_v5 = vadd.f32 %v3057_v34, %v1587_v47  ;;  %v1664_v6 = vadd.f32 %v3059_v35, %v1588_v48 }
 0x30f   : > { %1701 = vst [vmem:[%s2820_s27 + $0xb0] sm:$0xff] %v1637_v20  ;;  %1702 = vst [vmem:[%s2820_s27 + $0xb8] sm:$0xff] %v1638_v21  ;;  %v1646_v37 = vadd.f32 %v3059_v35, %v1570_v3  ;;  %v1596_v3 = vld [vmem:[#allocation2 + $0x1c8] sm:$0xff]  ;;  %v1597_v4 = vld [vmem:[#allocation2 + $0x1d0] sm:$0xff]  ;;  %v1665_v7 = vadd.f32 %v3057_v34, %v1589_v53  ;;  %v1666_v8 = vadd.f32 %v3059_v35, %v1590_v54 }
 0x310   : > { %1703 = vst [vmem:[%s2820_s27 + $0xc0] sm:$0xff] %v1639_v25  ;;  %1704 = vst [vmem:[%s2820_s27 + $0xc8] sm:$0xff] %v1640_v26  ;;  %v1599_v10 = vld [vmem:[#allocation2 + $0x1e0] sm:$0xff]  ;;  %v1600_v11 = vld [vmem:[#allocation2 + $0x1e8] sm:$0xff]  ;;  %v1667_v12 = vadd.f32 %v3057_v34, %v1591_v55  ;;  %v1668_v13 = vadd.f32 %v3059_v35, %v1592_v59  ;;  %v1669_v14 = vadd.f32 %v3057_v34, %v1593_v60 }
 0x311   : > { %1705 = vst [vmem:[%s2820_s27 + $0xd0] sm:$0xff] %v1641_v27  ;;  %1706 = vst [vmem:[%s2820_s27 + $0xd8] sm:$0xff] %v1642_v28  ;;  %v1670_v15 = vadd.f32 %v3059_v35, %v1594_v61  ;;  %v1601_v16 = vld [vmem:[#allocation2 + $0x1f0] sm:$0xff]  ;;  %v1602_v17 = vld [vmem:[#allocation2 + $0x1f8] sm:$0xff]  ;;  %v1671_v18 = vadd.f32 %v3057_v34, %v1595_v2  ;;  %v1672_v19 = vadd.f32 %v3059_v35, %v1596_v3 }
 0x312   : > { %1707 = vst [vmem:[%s2820_s27 + $0xe0] sm:$0xff] %v1643_v32  ;;  %1708 = vst [vmem:[%s2820_s27 + $0xe8] sm:$0xff] %v1644_v33  ;;  %v1673_v20 = vadd.f32 %v3057_v34, %v1597_v4  ;;  %v1674_v21 = vadd.f32 %v3059_v35, %v1598_v9  ;;  %v1675_v22 = vadd.f32 %v3057_v34, %v1599_v10 }
 0x313   : > { %1709 = vst [vmem:[%s2820_s27 + $0xf0] sm:$0xff] %v1645_v36  ;;  %1710 = vst [vmem:[%s2820_s27 + $0xf8] sm:$0xff] %v1646_v37  ;;  %v1676_v23 = vadd.f32 %v3059_v35, %v1600_v11  ;;  %v1677_v24 = vadd.f32 %v3057_v34, %v1601_v16  ;;  %v1678_v25 = vadd.f32 %v3059_v35, %v1602_v17 }
 0x314   : > { %1711 = vst [vmem:[%s2820_s27 + $0x100] sm:$0xff] %v1647_v42  ;;  %1712 = vst [vmem:[%s2820_s27 + $0x108] sm:$0xff] %v1648_v43 }
 0x315   : > { %1713 = vst [vmem:[%s2820_s27 + $0x110] sm:$0xff] %v1649_v44  ;;  %1714 = vst [vmem:[%s2820_s27 + $0x118] sm:$0xff] %v1650_v45 }
 0x316   : > { %1715 = vst [vmem:[%s2820_s27 + $0x120] sm:$0xff] %v1651_v49  ;;  %1716 = vst [vmem:[%s2820_s27 + $0x128] sm:$0xff] %v1652_v50 }
 0x317   : > { %1717 = vst [vmem:[%s2820_s27 + $0x130] sm:$0xff] %v1653_v51  ;;  %1718 = vst [vmem:[%s2820_s27 + $0x138] sm:$0xff] %v1654_v52 }
 0x318   : > { %1719 = vst [vmem:[%s2820_s27 + $0x140] sm:$0xff] %v1655_v56  ;;  %1720 = vst [vmem:[%s2820_s27 + $0x148] sm:$0xff] %v1656_v57 }
 0x319   : > { %1721 = vst [vmem:[%s2820_s27 + $0x150] sm:$0xff] %v1657_v39  ;;  %1722 = vst [vmem:[%s2820_s27 + $0x158] sm:$0xff] %v1658_v58 }
 0x31a   : > { %1723 = vst [vmem:[%s2820_s27 + $0x160] sm:$0xff] %v1659_v62  ;;  %1724 = vst [vmem:[%s2820_s27 + $0x168] sm:$0xff] %v1660_v63 }
 0x31b   : > { %1725 = vst [vmem:[%s2820_s27 + $0x170] sm:$0xff] %v1661_v0  ;;  %1726 = vst [vmem:[%s2820_s27 + $0x178] sm:$0xff] %v1662_v1 }
 0x31c   : > { %1727 = vst [vmem:[%s2820_s27 + $0x180] sm:$0xff] %v1663_v5  ;;  %1728 = vst [vmem:[%s2820_s27 + $0x188] sm:$0xff] %v1664_v6 }
 0x31d   : > { %1729 = vst [vmem:[%s2820_s27 + $0x190] sm:$0xff] %v1665_v7  ;;  %1730 = vst [vmem:[%s2820_s27 + $0x198] sm:$0xff] %v1666_v8 }
 0x31e   : > { %1731 = vst [vmem:[%s2820_s27 + $0x1a0] sm:$0xff] %v1667_v12  ;;  %1732 = vst [vmem:[%s2820_s27 + $0x1a8] sm:$0xff] %v1668_v13 }
 0x31f   : > { %1733 = vst [vmem:[%s2820_s27 + $0x1b0] sm:$0xff] %v1669_v14  ;;  %1734 = vst [vmem:[%s2820_s27 + $0x1b8] sm:$0xff] %v1670_v15 }
 0x320   : > { %1735 = vst [vmem:[%s2820_s27 + $0x1c0] sm:$0xff] %v1671_v18  ;;  %1736 = vst [vmem:[%s2820_s27 + $0x1c8] sm:$0xff] %v1672_v19 }
 0x321   : > { %1737 = vst [vmem:[%s2820_s27 + $0x1d0] sm:$0xff] %v1673_v20  ;;  %1738 = vst [vmem:[%s2820_s27 + $0x1d8] sm:$0xff] %v1674_v21 }
 0x322   : > { %1739 = vst [vmem:[%s2820_s27 + $0x1e0] sm:$0xff] %v1675_v22  ;;  %1740 = vst [vmem:[%s2820_s27 + $0x1e8] sm:$0xff] %v1676_v23 }
 0x323   : > { %1741 = vst [vmem:[%s2820_s27 + $0x1f0] sm:$0xff] %v1677_v24  ;;  %1742 = vst [vmem:[%s2820_s27 + $0x1f8] sm:$0xff] %v1678_v25 }
 0x324 PF: > { %1749 = sbr.rel (!%p2569_p13) target bundleno = 844 (0x34c), region = 98  ;;  %v1768_v34 = vld [vmem:[%s2820_s27] sm:$0xff] (%p2569_p13)  ;;  %v1770_v35 = vld [vmem:[%s2820_s27 + $0x8] sm:$0xff] (%p2569_p13)  ;;  %v1772_v26 = vld [vmem:[%s2820_s27 + $0x10] sm:$0xff] (%p2569_p13) }
 0x325   : > { %s2212_s29 = smul.u32 (%p2569_p13), 192, %s2404_s26  ;;  %v1774_v27 = vld [vmem:[%s2820_s27 + $0x18] sm:$0xff] (%p2569_p13)  ;;  %v1788_v36 = vld [vmem:[%s2820_s27 + $0x50] sm:$0xff] (%p2569_p13)  ;;  %s3402_s26 = sld [smem:[#allocation15_spill]] (%p2569_p13)  ;;  %v1792_v38 = vld [vmem:[%s2820_s27 + $0x60] sm:$0xff] (%p2569_p13) }
 0x326   : > { %v1790_v37 = vld [vmem:[%s2820_s27 + $0x58] sm:$0xff] (%p2569_p13)  ;;  %v1794_v40 = vld [vmem:[%s2820_s27 + $0x68] sm:$0xff] (%p2569_p13)  ;;  %v1796_v41 = vld [vmem:[%s2820_s27 + $0x70] sm:$0xff] (%p2569_p13) }
 0x327   : > { %v1776_v28 = vld [vmem:[%s2820_s27 + $0x20] sm:$0xff] (%p2569_p13)  ;;  %v1778_v29 = vld [vmem:[%s2820_s27 + $0x28] sm:$0xff] (%p2569_p13)  ;;  %s1753_s24 = sadd.s32 (%p2569_p13), %s2212_s29, %s2796_s10  ;;  %v1798_v42 = vld [vmem:[%s2820_s27 + $0x78] sm:$0xff] (%p2569_p13) }
 0x328   : > { %v1780_v30 = vld [vmem:[%s2820_s27 + $0x30] sm:$0xff] (%p2569_p13)  ;;  %v1782_v31 = vld [vmem:[%s2820_s27 + $0x38] sm:$0xff] (%p2569_p13)  ;;  %s2062_s20 = sshll.u32 (%p2569_p13), %s1753_s24, 3  ;;  %v1800_v43 = vld [vmem:[%s2820_s27 + $0x80] sm:$0xff] (%p2569_p13) }
 0x329   : > { %v1802_v44 = vld [vmem:[%s2820_s27 + $0x88] sm:$0xff] (%p2569_p13)  ;;  %v1804_v45 = vld [vmem:[%s2820_s27 + $0x90] sm:$0xff] (%p2569_p13)  ;;  %v1806_v46 = vld [vmem:[%s2820_s27 + $0x98] sm:$0xff] (%p2569_p13) }
 0x32a   : > { %v1808_v47 = vld [vmem:[%s2820_s27 + $0xa0] sm:$0xff] (%p2569_p13)  ;;  %v1810_v48 = vld [vmem:[%s2820_s27 + $0xa8] sm:$0xff] (%p2569_p13)  ;;  %v1812_v49 = vld [vmem:[%s2820_s27 + $0xb0] sm:$0xff] (%p2569_p13) }
 0x32b   : > { %v1784_v32 = vld [vmem:[%s2820_s27 + $0x40] sm:$0xff]  ;;  %v1786_v33 = vld [vmem:[%s2820_s27 + $0x48] sm:$0xff]  ;;  %s3208_s6 = scalar_lea.vmem %s3402_s26, %s2062_s20  ;;  %v1814_v50 = vld [vmem:[%s2820_s27 + $0xb8] sm:$0xff] }
 0x32c   : > { %1769 = vst [vmem:[%s3208_s6] sm:$0xff] %v1768_v34  ;;  %1771 = vst [vmem:[%s3208_s6 + $0x8] sm:$0xff] %v1770_v35  ;;  %v1816_v51 = vld [vmem:[%s2820_s27 + $0xc0] sm:$0xff]  ;;  %v1818_v52 = vld [vmem:[%s2820_s27 + $0xc8] sm:$0xff] }
 0x32d   : > { %1773 = vst [vmem:[%s3208_s6 + $0x30] sm:$0xff] %v1772_v26  ;;  %1775 = vst [vmem:[%s3208_s6 + $0x38] sm:$0xff] %v1774_v27  ;;  %v1820_v53 = vld [vmem:[%s2820_s27 + $0xd0] sm:$0xff]  ;;  %v1822_v54 = vld [vmem:[%s2820_s27 + $0xd8] sm:$0xff] }
 0x32e   : > { %1777 = vst [vmem:[%s3208_s6 + $0x60] sm:$0xff] %v1776_v28  ;;  %1779 = vst [vmem:[%s3208_s6 + $0x68] sm:$0xff] %v1778_v29  ;;  %v1824_v55 = vld [vmem:[%s2820_s27 + $0xe0] sm:$0xff]  ;;  %v1826_v56 = vld [vmem:[%s2820_s27 + $0xe8] sm:$0xff] }
 0x32f   : > { %1781 = vst [vmem:[%s3208_s6 + $0x90] sm:$0xff] %v1780_v30  ;;  %1783 = vst [vmem:[%s3208_s6 + $0x98] sm:$0xff] %v1782_v31  ;;  %v1828_v57 = vld [vmem:[%s2820_s27 + $0xf0] sm:$0xff]  ;;  %v1830_v39 = vld [vmem:[%s2820_s27 + $0xf8] sm:$0xff] }
 0x330   : > { %1785 = vst [vmem:[%s3208_s6 + $0xc0] sm:$0xff] %v1784_v32  ;;  %1787 = vst [vmem:[%s3208_s6 + $0xc8] sm:$0xff] %v1786_v33  ;;  %v1832_v58 = vld [vmem:[%s2820_s27 + $0x100] sm:$0xff]  ;;  %v1834_v59 = vld [vmem:[%s2820_s27 + $0x108] sm:$0xff] }
 0x331   : > { %1789 = vst [vmem:[%s3208_s6 + $0xf0] sm:$0xff] %v1788_v36  ;;  %1791 = vst [vmem:[%s3208_s6 + $0xf8] sm:$0xff] %v1790_v37  ;;  %v1836_v60 = vld [vmem:[%s2820_s27 + $0x110] sm:$0xff]  ;;  %v1838_v61 = vld [vmem:[%s2820_s27 + $0x118] sm:$0xff] }
 0x332   : > { %1793 = vst [vmem:[%s3208_s6 + $0x120] sm:$0xff] %v1792_v38  ;;  %1795 = vst [vmem:[%s3208_s6 + $0x128] sm:$0xff] %v1794_v40  ;;  %v1840_v62 = vld [vmem:[%s2820_s27 + $0x120] sm:$0xff]  ;;  %v1842_v63 = vld [vmem:[%s2820_s27 + $0x128] sm:$0xff] }
 0x333   : > { %1797 = vst [vmem:[%s3208_s6 + $0x150] sm:$0xff] %v1796_v41  ;;  %1799 = vst [vmem:[%s3208_s6 + $0x158] sm:$0xff] %v1798_v42  ;;  %v1844_v0 = vld [vmem:[%s2820_s27 + $0x130] sm:$0xff]  ;;  %v1846_v1 = vld [vmem:[%s2820_s27 + $0x138] sm:$0xff] }
 0x334   : > { %1801 = vst [vmem:[%s3208_s6 + $0x180] sm:$0xff] %v1800_v43  ;;  %1803 = vst [vmem:[%s3208_s6 + $0x188] sm:$0xff] %v1802_v44  ;;  %v1848_v2 = vld [vmem:[%s2820_s27 + $0x140] sm:$0xff]  ;;  %v1850_v3 = vld [vmem:[%s2820_s27 + $0x148] sm:$0xff] }
 0x335   : > { %1805 = vst [vmem:[%s3208_s6 + $0x1b0] sm:$0xff] %v1804_v45  ;;  %1807 = vst [vmem:[%s3208_s6 + $0x1b8] sm:$0xff] %v1806_v46  ;;  %v1852_v4 = vld [vmem:[%s2820_s27 + $0x150] sm:$0xff]  ;;  %v1854_v5 = vld [vmem:[%s2820_s27 + $0x158] sm:$0xff] }
 0x336   : > { %1809 = vst [vmem:[%s3208_s6 + $0x1e0] sm:$0xff] %v1808_v47  ;;  %1811 = vst [vmem:[%s3208_s6 + $0x1e8] sm:$0xff] %v1810_v48  ;;  %v1856_v6 = vld [vmem:[%s2820_s27 + $0x160] sm:$0xff]  ;;  %v1858_v7 = vld [vmem:[%s2820_s27 + $0x168] sm:$0xff] }
 0x337   : > { %1813 = vst [vmem:[%s3208_s6 + $0x210] sm:$0xff] %v1812_v49  ;;  %1815 = vst [vmem:[%s3208_s6 + $0x218] sm:$0xff] %v1814_v50  ;;  %v1860_v8 = vld [vmem:[%s2820_s27 + $0x170] sm:$0xff]  ;;  %v1862_v9 = vld [vmem:[%s2820_s27 + $0x178] sm:$0xff] }
 0x338   : > { %1817 = vst [vmem:[%s3208_s6 + $0x240] sm:$0xff] %v1816_v51  ;;  %1819 = vst [vmem:[%s3208_s6 + $0x248] sm:$0xff] %v1818_v52  ;;  %v1864_v10 = vld [vmem:[%s2820_s27 + $0x180] sm:$0xff]  ;;  %v1866_v11 = vld [vmem:[%s2820_s27 + $0x188] sm:$0xff] }
 0x339   : > { %1821 = vst [vmem:[%s3208_s6 + $0x270] sm:$0xff] %v1820_v53  ;;  %1823 = vst [vmem:[%s3208_s6 + $0x278] sm:$0xff] %v1822_v54  ;;  %v1868_v12 = vld [vmem:[%s2820_s27 + $0x190] sm:$0xff]  ;;  %v1870_v13 = vld [vmem:[%s2820_s27 + $0x198] sm:$0xff] }
 0x33a   : > { %1825 = vst [vmem:[%s3208_s6 + $0x2a0] sm:$0xff] %v1824_v55  ;;  %1827 = vst [vmem:[%s3208_s6 + $0x2a8] sm:$0xff] %v1826_v56  ;;  %v1872_v14 = vld [vmem:[%s2820_s27 + $0x1a0] sm:$0xff]  ;;  %v1874_v15 = vld [vmem:[%s2820_s27 + $0x1a8] sm:$0xff] }
 0x33b   : > { %1829 = vst [vmem:[%s3208_s6 + $0x2d0] sm:$0xff] %v1828_v57  ;;  %1831 = vst [vmem:[%s3208_s6 + $0x2d8] sm:$0xff] %v1830_v39  ;;  %v1876_v16 = vld [vmem:[%s2820_s27 + $0x1b0] sm:$0xff]  ;;  %v1878_v17 = vld [vmem:[%s2820_s27 + $0x1b8] sm:$0xff] }
 0x33c   : > { %1833 = vst [vmem:[%s3208_s6 + $0x300] sm:$0xff] %v1832_v58  ;;  %1835 = vst [vmem:[%s3208_s6 + $0x308] sm:$0xff] %v1834_v59  ;;  %v1880_v18 = vld [vmem:[%s2820_s27 + $0x1c0] sm:$0xff]  ;;  %v1882_v19 = vld [vmem:[%s2820_s27 + $0x1c8] sm:$0xff] }
 0x33d   : > { %1837 = vst [vmem:[%s3208_s6 + $0x330] sm:$0xff] %v1836_v60  ;;  %1839 = vst [vmem:[%s3208_s6 + $0x338] sm:$0xff] %v1838_v61  ;;  %v1884_v20 = vld [vmem:[%s2820_s27 + $0x1d0] sm:$0xff]  ;;  %v1886_v21 = vld [vmem:[%s2820_s27 + $0x1d8] sm:$0xff] }
 0x33e   : > { %1841 = vst [vmem:[%s3208_s6 + $0x360] sm:$0xff] %v1840_v62  ;;  %1843 = vst [vmem:[%s3208_s6 + $0x368] sm:$0xff] %v1842_v63  ;;  %v1888_v22 = vld [vmem:[%s2820_s27 + $0x1e0] sm:$0xff]  ;;  %v1890_v23 = vld [vmem:[%s2820_s27 + $0x1e8] sm:$0xff] }
 0x33f   : > { %1845 = vst [vmem:[%s3208_s6 + $0x390] sm:$0xff] %v1844_v0  ;;  %1847 = vst [vmem:[%s3208_s6 + $0x398] sm:$0xff] %v1846_v1  ;;  %v1892_v24 = vld [vmem:[%s2820_s27 + $0x1f0] sm:$0xff]  ;;  %v1894_v25 = vld [vmem:[%s2820_s27 + $0x1f8] sm:$0xff] }
 0x340   : > { %1849 = vst [vmem:[%s3208_s6 + $0x3c0] sm:$0xff] %v1848_v2  ;;  %1851 = vst [vmem:[%s3208_s6 + $0x3c8] sm:$0xff] %v1850_v3 }
 0x341   : > { %1853 = vst [vmem:[%s3208_s6 + $0x3f0] sm:$0xff] %v1852_v4  ;;  %1855 = vst [vmem:[%s3208_s6 + $0x3f8] sm:$0xff] %v1854_v5 }
 0x342   : > { %1857 = vst [vmem:[%s3208_s6 + $0x420] sm:$0xff] %v1856_v6  ;;  %1859 = vst [vmem:[%s3208_s6 + $0x428] sm:$0xff] %v1858_v7 }
 0x343   : > { %1861 = vst [vmem:[%s3208_s6 + $0x450] sm:$0xff] %v1860_v8  ;;  %1863 = vst [vmem:[%s3208_s6 + $0x458] sm:$0xff] %v1862_v9 }
 0x344   : > { %1865 = vst [vmem:[%s3208_s6 + $0x480] sm:$0xff] %v1864_v10  ;;  %1867 = vst [vmem:[%s3208_s6 + $0x488] sm:$0xff] %v1866_v11 }
 0x345   : > { %1869 = vst [vmem:[%s3208_s6 + $0x4b0] sm:$0xff] %v1868_v12  ;;  %1871 = vst [vmem:[%s3208_s6 + $0x4b8] sm:$0xff] %v1870_v13 }
 0x346   : > { %1873 = vst [vmem:[%s3208_s6 + $0x4e0] sm:$0xff] %v1872_v14  ;;  %1875 = vst [vmem:[%s3208_s6 + $0x4e8] sm:$0xff] %v1874_v15 }
 0x347   : > { %1877 = vst [vmem:[%s3208_s6 + $0x510] sm:$0xff] %v1876_v16  ;;  %1879 = vst [vmem:[%s3208_s6 + $0x518] sm:$0xff] %v1878_v17 }
 0x348   : > { %1881 = vst [vmem:[%s3208_s6 + $0x540] sm:$0xff] %v1880_v18  ;;  %1883 = vst [vmem:[%s3208_s6 + $0x548] sm:$0xff] %v1882_v19 }
 0x349   : > { %1885 = vst [vmem:[%s3208_s6 + $0x570] sm:$0xff] %v1884_v20  ;;  %1887 = vst [vmem:[%s3208_s6 + $0x578] sm:$0xff] %v1886_v21 }
 0x34a   : > { %1889 = vst [vmem:[%s3208_s6 + $0x5a0] sm:$0xff] %v1888_v22  ;;  %1891 = vst [vmem:[%s3208_s6 + $0x5a8] sm:$0xff] %v1890_v23 }
 0x34b   : > { %1893 = vst [vmem:[%s3208_s6 + $0x5d0] sm:$0xff] %v1892_v24  ;;  %1895 = vst [vmem:[%s3208_s6 + $0x5d8] sm:$0xff] %v1894_v25 }
 0x34c PF: > { %s15_s30 = sadd.s32 1, %s2420_s30   ;;  %s3404_s24 = sld [smem:[#allocation7_spill]] }
 0x34d   : > { %p3327_p8 = scmp.ge.s32.totalorder %s15_s30, 14   ;;  %s3405_s25 = sld [smem:[#allocation8_spill]] }
 0x34e   : > { %s3406_s26 = sld [smem:[#allocation9_spill]]  ;;  %s3407_s27 = sld [smem:[#allocation10_spill]] }
 0x34f   : > { %s3408_s28 = sld [smem:[#allocation11_spill]]  ;;  %s3409_s29 = sld [smem:[#allocation12_spill]] }
 0x350   : > { %s3410_s18 = smov %s2376_s19  ;;  %s3411_s19 = smov %s2567_s15 }
 0x351   : > { %s3412_s20 = smov %s2384_s21  ;;  %s3413_s21 = smov %s2551_s17 }
 0x352   : > { %s3414_s22 = smov %s2392_s23  ;;  %s3415_s23 = smov %s2548_s16 }
 0x353   :  { %14 = sbr.rel (!%p3327_p8) target bundleno = 11 (0xb), region = 170 }

</bundles_post_ra>
